<compile_context>
chip_gen: v5e
topology: v5e:2x2
jax: 0.10.0
libtpu: 0.0.40
codegen_flags: <defaults>
</compile_context>

<pallas_src>
import jax
import jax.numpy as jnp
from jax.experimental import pallas as pl
from jax.experimental.pallas import tpu as pltpu

# ----------------------------- config ---------------------------------------
INPUT_DIM = 16
HIDDEN_DIM = 32
OUTPUT_DIM = 32
NUM_LAYERS = 3                    # -> exactly 2 SAGE layers (kernel assumes this)
HEADS = 8
DH = HIDDEN_DIM // HEADS          # per-head dim of the GAT layer
BN_EPS = 1e-5
NEG_SLOPE = 0.2                   # GATConv LeakyReLU slope
EDGE_ATTR_DIM = 3
EDGE_ATTR_PAD = 8                 # pad edge_attr 3 -> 8 (zero rows in the folded weight)

# ---- packed weight-slab row offsets (all multiples of 8, 32 columns) --------
_OFF_WIN = 0        # (16, 32) input transform (BN folded)
_OFF_WGAT = 16      # (32, 32) GAT projection (all heads, flat)
_OFF_SAGE1 = 48     # (64, 32) [Wl1; Wr1] (BN folded)
_OFF_SAGE2 = 112    # (64, 32) [Wl2; Wr2] (BN folded)
_OFF_WSC1 = 176     # (32, 32) supplier trunk layer 1 (BN folded)
_OFF_WSC2 = 208     # (32, 32) supplier trunk layer 2 (cols 16: zero)
_OFF_WHD = 240      # (64, 32) packed supplier(0:4)|loc(4:7)|perf(7:8) head
_OFF_WCF1S = 304    # (32, 32) carbon-flow layer-1, src-embedding block (BN folded)
_OFF_WCF1D = 336    # (32, 32) carbon-flow layer-1, dst-embedding block
_OFF_WCF1A = 368    # (8, 32)  carbon-flow layer-1, edge-attr block (rows 3: zero)
_OFF_WCF2 = 376     # (32, 32) carbon-flow layer-2 (cols 16: zero)
_OFF_WCF3 = 408     # (32, 32) carbon-flow layer-3 (col 0 real)
_W_ROWS = 440

# ---- packed bias/scale-slab rows (each a (1, <=32) row) ---------------------
_B_IN, _B_S0, _B_B0, _B_B1, _B_B2 = 0, 1, 2, 3, 4
_B_SC1, _B_SC2, _B_HD, _B_CF1, _B_CF2, _B_CF3 = 5, 6, 7, 8, 9, 10
_B_ASRC, _B_ADST = 11, 12        # GAT attention vectors, flattened head-major
_B_ROWS = 16


def _vmem():
    return pl.BlockSpec(memory_space=pltpu.MemorySpace.VMEM)


# ----------------------------- fused kernel ----------------------------------
def _fused_gnn_kernel(x_ref, idxc_ref, dstr_ref, eattr_ref, w_ref, b_ref,
                      node_ref, cflow_ref):
    f32 = jnp.float32
    n = x_ref.shape[0]
    e = dstr_ref.shape[1]

    def wslice(off, rows, cols=HIDDEN_DIM):
        return w_ref[off:off + rows, 0:cols]

    def bias(row, cols=HIDDEN_DIM):
        return b_ref[row:row + 1, 0:cols]

    # ---- graph structure, built in-kernel (no wrapper XLA glue) -------------
    idx_col = idxc_ref[...]                                              # (2E,1) int32 [src; dst]
    sel_oh = (jax.lax.broadcasted_iota(jnp.int32, (2 * e, n), 1)
              == idx_col).astype(f32)                                    # (2E, N) one-hot rows
    src_oh = sel_oh[0:e, :]                                              # (E, N)
    dst_ohT = (jax.lax.broadcasted_iota(jnp.int32, (n, e), 0)
               == dstr_ref[...]).astype(f32)                             # (N, E)
    adj = jnp.dot(dst_ohT, src_oh, preferred_element_type=f32)           # adj[i,j] = #edges j->i
    deg = jnp.sum(adj, axis=-1, keepdims=True)
    a_mean = adj * pl.reciprocal(jnp.maximum(deg, 1.0), approx=True)     # SAGE mean aggregation
    ii = jax.lax.broadcasted_iota(jnp.int32, (n, n), 0)
    jj = jax.lax.broadcasted_iota(jnp.int32, (n, n), 1)
    eye = (ii == jj).astype(f32)
    adj_gat = adj * (1.0 - eye) + eye                                    # GATConv: fresh self-loops
    # mask + duplicate-edge count weighting as one additive log term; the forced
    # self-loop guarantees every softmax row has a finite entry (no NaN).
    log_adj = jnp.where(adj_gat > 0.0, jnp.log(jnp.maximum(adj_gat, 1e-30)), -1e30)

    # ---- input_transform: Linear + BN(eval, folded) + ReLU (dropout = id) ---
    h = jnp.dot(x_ref[...], wslice(_OFF_WIN, INPUT_DIM),
                preferred_element_type=f32) + bias(_B_IN)
    h = jnp.maximum(h, 0.0)

    # ---- layer 0: GATConv, flattened multi-head (rows = head*N + node) ------
    wx = jnp.dot(h, wslice(_OFF_WGAT, HIDDEN_DIM), preferred_element_type=f32)   # (N, 32)
    col = jax.lax.broadcasted_iota(jnp.int32, (n, HIDDEN_DIM), 1)
    cmask = jnp.concatenate(
        [((col >= hd * DH) & (col < (hd + 1) * DH)).astype(f32) for hd in range(HEADS)],
        axis=0)                                                          # (H*N, 32) head-column mask
    wx_stack = jnp.concatenate([wx] * HEADS, axis=0)                     # (H*N, 32)
    # dterm[h,i] (target) as a column, sterm[h,j] (source) via one trans-B matmul
    dpart = jnp.sum(wx_stack * cmask * bias(_B_ADST), axis=-1, keepdims=True)    # (H*N, 1)
    spart = jnp.einsum('rc,jc->rj', cmask, wx * bias(_B_ASRC),
                       preferred_element_type=f32)                       # (H*N, N)
    logits = dpart + spart
    logits = jnp.where(logits >= 0.0, logits, NEG_SLOPE * logits)        # LeakyReLU(0.2)
    logits = logits + jnp.concatenate([log_adj] * HEADS, axis=0)         # mask + count weighting
    mx = jnp.max(logits, axis=-1, keepdims=True)
    p = jnp.exp(logits - mx)
    alpha = p * pl.reciprocal(jnp.sum(p, axis=-1, keepdims=True), approx=True)
    out_stack = jnp.dot(alpha, wx, preferred_element_type=f32) * cmask   # (H*N, 32)
    # fold the H head-blocks back to (N, 32): aligned adds only (no concat stores)
    gat = out_stack[0:n, :]
    for hd in range(1, HEADS):
        gat = gat + out_stack[hd * n:(hd + 1) * n, :]
    gat = gat * bias(_B_S0) + bias(_B_B0)                                # GAT bias + BN (folded)
    h = jnp.maximum(gat, 0.0) + h                                        # ReLU + residual

    # ---- layer 1: SAGEConv(mean) + BN + ReLU + residual (stacked weights) ---
    neigh = jnp.dot(a_mean, h, preferred_element_type=f32)
    s1 = jnp.dot(jnp.concatenate([neigh, h], axis=1), wslice(_OFF_SAGE1, 2 * HIDDEN_DIM),
                 preferred_element_type=f32) + bias(_B_B1)
    h = jnp.maximum(s1, 0.0) + h

    # ---- layer 2 (output layer): SAGEConv(mean) + BN only -------------------
    neigh = jnp.dot(a_mean, h, preferred_element_type=f32)
    nemb = jnp.dot(jnp.concatenate([neigh, h], axis=1), wslice(_OFF_SAGE2, 2 * HIDDEN_DIM),
                   preferred_element_type=f32) + bias(_B_B2)

    # ---- node heads: supplier trunk + packed supplier|loc|perf output -------
    sc = jnp.maximum(jnp.dot(nemb, wslice(_OFF_WSC1, HIDDEN_DIM),
                             preferred_element_type=f32) + bias(_B_SC1), 0.0)
    sc = jnp.maximum(jnp.dot(sc, wslice(_OFF_WSC2, HIDDEN_DIM),
                             preferred_element_type=f32) + bias(_B_SC2), 0.0)  # (N,32), cols 16: = 0
    hd_out = jnp.dot(jnp.concatenate([nemb, sc], axis=1), wslice(_OFF_WHD, 2 * HIDDEN_DIM),
                     preferred_element_type=f32) + bias(_B_HD)           # (N,32), cols 8: = 0
    node_ref[...] = jnp.concatenate([nemb, hd_out], axis=1)              # single (N, 64) output slab

    # ---- edge path: one gather matmul + associativity-folded carbon-flow MLP -
    both = jnp.dot(sel_oh, nemb, preferred_element_type=f32)             # (2E, 32): src rows | dst rows
    cf = (jnp.dot(both[0:e, :], wslice(_OFF_WCF1S, HIDDEN_DIM), preferred_element_type=f32)
          + jnp.dot(both[e:2 * e, :], wslice(_OFF_WCF1D, HIDDEN_DIM), preferred_element_type=f32)
          + jnp.dot(eattr_ref[...], wslice(_OFF_WCF1A, EDGE_ATTR_PAD), preferred_element_type=f32)
          + bias(_B_CF1))
    cf = jnp.maximum(cf, 0.0)
    cf = jnp.maximum(jnp.dot(cf, wslice(_OFF_WCF2, HIDDEN_DIM),
                             preferred_element_type=f32) + bias(_B_CF2), 0.0)   # (E,32), cols 16: = 0
    cflow_ref[...] = (jnp.dot(cf, wslice(_OFF_WCF3, HIDDEN_DIM, cols=1),
                              preferred_element_type=f32) + bias(_B_CF3, cols=1))


# ----------------------------- params ----------------------------------------
def _bn_affine(dim):
    gamma = jnp.ones((1, dim), jnp.float32)
    beta = jnp.zeros((1, dim), jnp.float32)
    rmean = jnp.zeros((1, dim), jnp.float32)
    rvar = jnp.ones((1, dim), jnp.float32)
    scale = gamma / jnp.sqrt(rvar + BN_EPS)
    shift = beta - rmean * scale
    return scale, shift


def _init_params(key):
    ks = iter(jax.random.split(key, 40))

    def lin(din, dout):
        w = jax.random.normal(next(ks), (din, dout), jnp.float32) * 0.1
        b = jax.random.normal(next(ks), (1, dout), jnp.float32) * 0.01
        return w, b

    p = {}
    p['w_in'], p['b_in'] = lin(INPUT_DIM, HIDDEN_DIM)
    p['bn_in'] = _bn_affine(HIDDEN_DIM)
    # GATConv(HIDDEN, HIDDEN//8, heads=8)
    p['w_gat'] = jax.random.normal(next(ks), (HIDDEN_DIM, HEADS * DH), jnp.float32) * 0.1
    p['att_src'] = jax.random.normal(next(ks), (HEADS, DH), jnp.float32) * 0.1
    p['att_dst'] = jax.random.normal(next(ks), (HEADS, DH), jnp.float32) * 0.1
    p['b_gat'] = jnp.zeros((1, HEADS * DH), jnp.float32)
    p['bn0'] = _bn_affine(HIDDEN_DIM)
    # SAGEConv layers: (NUM_LAYERS - 2) hidden + 1 output  (== 2 for NUM_LAYERS=3)
    p['sage'] = []
    dims = [(HIDDEN_DIM, HIDDEN_DIM)] * (NUM_LAYERS - 2) + [(HIDDEN_DIM, OUTPUT_DIM)]
    for din, dout in dims:
        wl, bl = lin(din, dout)                                           # neighbor branch (bias)
        wr = jax.random.normal(next(ks), (din, dout), jnp.float32) * 0.1  # root branch (no bias)
        p['sage'].append((wl, bl, wr, _bn_affine(dout)))
    # heads
    p['cf1'] = lin(OUTPUT_DIM * 2 + EDGE_ATTR_DIM, HIDDEN_DIM)
    p['cf1_bn'] = _bn_affine(HIDDEN_DIM)
    p['cf2'] = lin(HIDDEN_DIM, HIDDEN_DIM // 2)
    p['cf3'] = lin(HIDDEN_DIM // 2, 1)
    p['sc1'] = lin(OUTPUT_DIM, HIDDEN_DIM)
    p['sc1_bn'] = _bn_affine(HIDDEN_DIM)
    p['sc2'] = lin(HIDDEN_DIM, HIDDEN_DIM // 2)
    p['sc3'] = lin(HIDDEN_DIM // 2, 4)
    p['loc'] = lin(OUTPUT_DIM, 3)
    p['perf'] = lin(OUTPUT_DIM, 1)
    return p


def _prepare_packed(p):
    """Fold eval-mode BatchNorm into adjacent linears and pack everything into
    one (440,32) weight slab + one (16,32) bias/scale slab (2 input DMAs)."""
    def fold(wb, bn):
        w_, b_ = wb
        s, t = bn
        return w_ * s, b_ * s + t

    W = jnp.zeros((_W_ROWS, HIDDEN_DIM), jnp.float32)
    B = jnp.zeros((_B_ROWS, HIDDEN_DIM), jnp.float32)

    w_in, b_in = fold((p['w_in'], p['b_in']), p['bn_in'])
    W = W.at[_OFF_WIN:_OFF_WIN + INPUT_DIM, :].set(w_in)
    B = B.at[_B_IN:_B_IN + 1, :].set(b_in)

    W = W.at[_OFF_WGAT:_OFF_WGAT + HIDDEN_DIM, :].set(p['w_gat'])
    s0, t0 = p['bn0']
    B = B.at[_B_S0:_B_S0 + 1, :].set(s0)
    B = B.at[_B_B0:_B_B0 + 1, :].set(p['b_gat'] * s0 + t0)
    B = B.at[_B_ASRC:_B_ASRC + 1, :].set(p['att_src'].reshape(1, HEADS * DH))
    B = B.at[_B_ADST:_B_ADST + 1, :].set(p['att_dst'].reshape(1, HEADS * DH))

    (wl1, bl1, wr1, bn1), (wl2, bl2, wr2, bn2) = p['sage']
    s, t = bn1
    W = W.at[_OFF_SAGE1:_OFF_SAGE1 + HIDDEN_DIM, :].set(wl1 * s)
    W = W.at[_OFF_SAGE1 + HIDDEN_DIM:_OFF_SAGE1 + 2 * HIDDEN_DIM, :].set(wr1 * s)
    B = B.at[_B_B1:_B_B1 + 1, :].set(bl1 * s + t)
    s, t = bn2
    W = W.at[_OFF_SAGE2:_OFF_SAGE2 + HIDDEN_DIM, :].set(wl2 * s)
    W = W.at[_OFF_SAGE2 + HIDDEN_DIM:_OFF_SAGE2 + 2 * HIDDEN_DIM, :].set(wr2 * s)
    B = B.at[_B_B2:_B_B2 + 1, :].set(bl2 * s + t)

    wsc1, bsc1 = fold(p['sc1'], p['sc1_bn'])
    W = W.at[_OFF_WSC1:_OFF_WSC1 + HIDDEN_DIM, :].set(wsc1)
    B = B.at[_B_SC1:_B_SC1 + 1, :].set(bsc1)
    wsc2, bsc2 = p['sc2']                                   # (32,16)
    W = W.at[_OFF_WSC2:_OFF_WSC2 + HIDDEN_DIM, 0:16].set(wsc2)
    B = B.at[_B_SC2:_B_SC2 + 1, 0:16].set(bsc2)

    # packed small node heads (input = [nemb(32) | sc(32, cols 16: zero)])
    wsc3, bsc3 = p['sc3']                                   # (16,4)
    wloc, bloc = p['loc']                                   # (32,3)
    wperf, bperf = p['perf']                                # (32,1)
    W = W.at[_OFF_WHD + OUTPUT_DIM:_OFF_WHD + OUTPUT_DIM + 16, 0:4].set(wsc3)
    W = W.at[_OFF_WHD:_OFF_WHD + OUTPUT_DIM, 4:7].set(wloc)
    W = W.at[_OFF_WHD:_OFF_WHD + OUTPUT_DIM, 7:8].set(wperf)
    B = B.at[_B_HD:_B_HD + 1, 0:4].set(bsc3)
    B = B.at[_B_HD:_B_HD + 1, 4:7].set(bloc)
    B = B.at[_B_HD:_B_HD + 1, 7:8].set(bperf)

    # carbon-flow MLP layer 1 split by associativity (src / dst / edge_attr blocks)
    wcf1, bcf1 = fold(p['cf1'], p['cf1_bn'])                # (67,32)
    W = W.at[_OFF_WCF1S:_OFF_WCF1S + OUTPUT_DIM, :].set(wcf1[0:OUTPUT_DIM])
    W = W.at[_OFF_WCF1D:_OFF_WCF1D + OUTPUT_DIM, :].set(wcf1[OUTPUT_DIM:2 * OUTPUT_DIM])
    W = W.at[_OFF_WCF1A:_OFF_WCF1A + EDGE_ATTR_DIM, :].set(wcf1[2 * OUTPUT_DIM:])
    B = B.at[_B_CF1:_B_CF1 + 1, :].set(bcf1)
    wcf2, bcf2 = p['cf2']                                   # (32,16)
    W = W.at[_OFF_WCF2:_OFF_WCF2 + HIDDEN_DIM, 0:16].set(wcf2)
    B = B.at[_B_CF2:_B_CF2 + 1, 0:16].set(bcf2)
    wcf3, bcf3 = p['cf3']                                   # (16,1)
    W = W.at[_OFF_WCF3:_OFF_WCF3 + 16, 0:1].set(wcf3)
    B = B.at[_B_CF3:_B_CF3 + 1, 0:1].set(bcf3)
    return W, B


# ----------------------------- forward ----------------------------------------
@jax.jit
def forward(packed_w, packed_b, x, edge_index, edge_attr):
    n = x.shape[0]
    e = edge_index.shape[1]
    ei = edge_index.astype(jnp.int32)
    idx_col = jnp.concatenate([ei[0], ei[1]], axis=0).reshape(2 * e, 1)   # [src; dst] column
    dst_row = ei[1].reshape(1, e)                                         # dst as a lane row
    eattr = jnp.pad(edge_attr.astype(jnp.float32),
                    ((0, 0), (0, EDGE_ATTR_PAD - edge_attr.shape[1])))

    node_out, cflow = pl.pallas_call(
        _fused_gnn_kernel,
        out_shape=(
            jax.ShapeDtypeStruct((n, OUTPUT_DIM + HIDDEN_DIM), jnp.float32),  # [nemb | heads] slab
            jax.ShapeDtypeStruct((e, 1), jnp.float32),
        ),
        in_specs=[_vmem()] * 6,
        out_specs=(_vmem(), _vmem()),
    )(x, idx_col, dst_row, eattr, packed_w, packed_b)

    return {
        'node_embeddings': node_out[:, 0:OUTPUT_DIM],
        'carbon_flows': cflow,
        'supplier_classes': node_out[:, OUTPUT_DIM:OUTPUT_DIM + 4],
        'location_pred': node_out[:, OUTPUT_DIM + 4:OUTPUT_DIM + 7],
        'performance_pred': node_out[:, OUTPUT_DIM + 7:OUTPUT_DIM + 8],
    }


if __name__ == "__main__":
    key = jax.random.PRNGKey(0)
    kp, kx, ke, ka = jax.random.split(key, 4)
    raw_params = _init_params(kp)
    packed_w, packed_b = _prepare_packed(raw_params)

    N, E = 16, 32
    x = jax.random.normal(kx, (N, INPUT_DIM), jnp.float32)
    edge_index = jax.random.randint(ke, (2, E), 0, N, dtype=jnp.int32)
    edge_attr = jax.random.normal(ka, (E, EDGE_ATTR_DIM), jnp.float32)

    out = forward(packed_w, packed_b, x, edge_index, edge_attr)
    out = jax.block_until_ready(out)

    assert out['node_embeddings'].shape == (N, OUTPUT_DIM)
    assert out['carbon_flows'].shape == (E, 1)
    assert out['supplier_classes'].shape == (N, 4)
    assert out['location_pred'].shape == (N, 3)
    assert out['performance_pred'].shape == (N, 1)
    assert all(bool(jnp.all(jnp.isfinite(v))) for v in out.values())
    print("KERNEL_OK")
</pallas_src>

<mosaic_0001>
module attributes {stable_mosaic.version = 11 : i64} {
  func.func @_fused_gnn_kernel(%arg0: memref<16x16xf32, #tpu.memory_space<vmem>>, %arg1: memref<64x1xi32, #tpu.memory_space<vmem>>, %arg2: memref<1x32xi32, #tpu.memory_space<vmem>>, %arg3: memref<32x8xf32, #tpu.memory_space<vmem>>, %arg4: memref<440x32xf32, #tpu.memory_space<vmem>>, %arg5: memref<16x32xf32, #tpu.memory_space<vmem>>, %arg6: memref<16x64xf32, #tpu.memory_space<vmem>>, %arg7: memref<32x1xf32, #tpu.memory_space<vmem>>) attributes {dimension_semantics = [], scalar_prefetch = 0 : i64, scratch_operands = 0 : i64, tpu.core_type = #tpu.core_type<tc>} {
    %c0 = arith.constant 0 : index
    %c0_0 = arith.constant 0 : index
    %0 = vector.load %arg1[%c0, %c0_0] : memref<64x1xi32, #tpu.memory_space<vmem>>, vector<64x1xi32>
    %1 = tpu.iota {dimensions = array<i32: 1>} : vector<64x16xi32>
    %2 = vector.broadcast %0 : vector<64x1xi32> to vector<64x16xi32>
    %3 = arith.cmpi eq, %1, %2 : vector<64x16xi32>
    %4 = arith.extui %3 : vector<64x16xi1> to vector<64x16xi32>
    %5 = arith.sitofp %4 : vector<64x16xi32> to vector<64x16xf32>
    %6 = vector.extract_strided_slice %5 {offsets = [0, 0], sizes = [32, 16], strides = [1, 1]} : vector<64x16xf32> to vector<32x16xf32>
    %7 = tpu.iota {dimensions = array<i32: 0>} : vector<16x32xi32>
    %c0_1 = arith.constant 0 : index
    %c0_2 = arith.constant 0 : index
    %8 = vector.load %arg2[%c0_1, %c0_2] : memref<1x32xi32, #tpu.memory_space<vmem>>, vector<1x32xi32>
    %9 = vector.broadcast %8 : vector<1x32xi32> to vector<16x32xi32>
    %10 = arith.cmpi eq, %7, %9 : vector<16x32xi32>
    %11 = arith.extui %10 : vector<16x32xi1> to vector<16x32xi32>
    %12 = arith.sitofp %11 : vector<16x32xi32> to vector<16x32xf32>
    %cst = arith.constant dense<0.000000e+00> : vector<16x16xf32>
    %13 = tpu.matmul %12, %6, %cst {dimension_numbers = #tpu.dot_dimension_numbers<[1], [0], [0], [1], [0, 0, 1, 1], [], []>} : vector<16x32xf32>, vector<32x16xf32>, vector<16x16xf32> -> vector<16x16xf32>
    %cst_3 = arith.constant dense<0.000000e+00> : vector<16xf32>
    %14 = vector.multi_reduction <add>, %13, %cst_3 [1] : vector<16x16xf32> to vector<16xf32>
    %15 = vector.shape_cast %14 : vector<16xf32> to vector<16x1xf32>
    %cst_4 = arith.constant 1.000000e+00 : f32
    %16 = vector.broadcast %cst_4 : f32 to vector<16x1xf32>
    %17 = arith.maximumf %15, %16 : vector<16x1xf32>
    %18 = tpu.reciprocal %17 {approx = true} : vector<16x1xf32> -> vector<16x1xf32>
    %19 = vector.broadcast %18 : vector<16x1xf32> to vector<16x16xf32>
    %20 = arith.mulf %13, %19 : vector<16x16xf32>
    %21 = tpu.iota {dimensions = array<i32: 0>} : vector<16x16xi32>
    %22 = tpu.iota {dimensions = array<i32: 1>} : vector<16x16xi32>
    %23 = arith.cmpi eq, %21, %22 : vector<16x16xi32>
    %24 = arith.extui %23 : vector<16x16xi1> to vector<16x16xi32>
    %25 = arith.sitofp %24 : vector<16x16xi32> to vector<16x16xf32>
    %cst_5 = arith.constant 1.000000e+00 : f32
    %26 = vector.broadcast %cst_5 : f32 to vector<16x16xf32>
    %27 = arith.subf %26, %25 : vector<16x16xf32>
    %28 = arith.mulf %13, %27 : vector<16x16xf32>
    %29 = arith.addf %28, %25 : vector<16x16xf32>
    %cst_6 = arith.constant 0.000000e+00 : f32
    %30 = vector.broadcast %cst_6 : f32 to vector<16x16xf32>
    %31 = arith.cmpf ogt, %29, %30 : vector<16x16xf32>
    %cst_7 = arith.constant 1.000000e-30 : f32
    %32 = vector.broadcast %cst_7 : f32 to vector<16x16xf32>
    %33 = arith.maximumf %29, %32 : vector<16x16xf32>
    %34 = math.log %33 : vector<16x16xf32>
    %cst_8 = arith.constant -1.000000e+30 : f32
    %35 = vector.broadcast %cst_8 : f32 to vector<16x16xf32>
    %36 = arith.select %31, %34, %35 : vector<16x16xi1>, vector<16x16xf32>
    %c0_9 = arith.constant 0 : index
    %c0_10 = arith.constant 0 : index
    %37 = vector.load %arg0[%c0_9, %c0_10] : memref<16x16xf32, #tpu.memory_space<vmem>>, vector<16x16xf32>
    %c0_11 = arith.constant 0 : index
    %c0_12 = arith.constant 0 : index
    %38 = vector.load %arg4[%c0_11, %c0_12] : memref<440x32xf32, #tpu.memory_space<vmem>>, vector<16x32xf32>
    %cst_13 = arith.constant dense<0.000000e+00> : vector<16x32xf32>
    %39 = tpu.matmul %37, %38, %cst_13 {dimension_numbers = #tpu.dot_dimension_numbers<[1], [0], [0], [1], [0, 0, 1, 1], [], []>} : vector<16x16xf32>, vector<16x32xf32>, vector<16x32xf32> -> vector<16x32xf32>
    %c0_14 = arith.constant 0 : index
    %c0_15 = arith.constant 0 : index
    %40 = vector.load %arg5[%c0_14, %c0_15] : memref<16x32xf32, #tpu.memory_space<vmem>>, vector<1x32xf32>
    %41 = vector.broadcast %40 : vector<1x32xf32> to vector<16x32xf32>
    %42 = arith.addf %39, %41 : vector<16x32xf32>
    %cst_16 = arith.constant 0.000000e+00 : f32
    %43 = vector.broadcast %cst_16 : f32 to vector<16x32xf32>
    %44 = arith.maximumf %42, %43 : vector<16x32xf32>
    %c16 = arith.constant 16 : index
    %c0_17 = arith.constant 0 : index
    %45 = vector.load %arg4[%c16, %c0_17] : memref<440x32xf32, #tpu.memory_space<vmem>>, vector<32x32xf32>
    %cst_18 = arith.constant dense<0.000000e+00> : vector<16x32xf32>
    %46 = tpu.matmul %44, %45, %cst_18 {dimension_numbers = #tpu.dot_dimension_numbers<[1], [0], [0], [1], [0, 0, 1, 1], [], []>} : vector<16x32xf32>, vector<32x32xf32>, vector<16x32xf32> -> vector<16x32xf32>
    %47 = tpu.iota {dimensions = array<i32: 1>} : vector<16x32xi32>
    %c0_i32 = arith.constant 0 : i32
    %48 = vector.broadcast %c0_i32 : i32 to vector<16x32xi32>
    %49 = arith.cmpi sge, %47, %48 : vector<16x32xi32>
    %c4_i32 = arith.constant 4 : i32
    %50 = vector.broadcast %c4_i32 : i32 to vector<16x32xi32>
    %51 = arith.cmpi slt, %47, %50 : vector<16x32xi32>
    %52 = arith.andi %49, %51 : vector<16x32xi1>
    %53 = arith.extui %52 : vector<16x32xi1> to vector<16x32xi32>
    %54 = arith.sitofp %53 : vector<16x32xi32> to vector<16x32xf32>
    %c4_i32_19 = arith.constant 4 : i32
    %55 = vector.broadcast %c4_i32_19 : i32 to vector<16x32xi32>
    %56 = arith.cmpi sge, %47, %55 : vector<16x32xi32>
    %c8_i32 = arith.constant 8 : i32
    %57 = vector.broadcast %c8_i32 : i32 to vector<16x32xi32>
    %58 = arith.cmpi slt, %47, %57 : vector<16x32xi32>
    %59 = arith.andi %56, %58 : vector<16x32xi1>
    %60 = arith.extui %59 : vector<16x32xi1> to vector<16x32xi32>
    %61 = arith.sitofp %60 : vector<16x32xi32> to vector<16x32xf32>
    %c8_i32_20 = arith.constant 8 : i32
    %62 = vector.broadcast %c8_i32_20 : i32 to vector<16x32xi32>
    %63 = arith.cmpi sge, %47, %62 : vector<16x32xi32>
    %c12_i32 = arith.constant 12 : i32
    %64 = vector.broadcast %c12_i32 : i32 to vector<16x32xi32>
    %65 = arith.cmpi slt, %47, %64 : vector<16x32xi32>
    %66 = arith.andi %63, %65 : vector<16x32xi1>
    %67 = arith.extui %66 : vector<16x32xi1> to vector<16x32xi32>
    %68 = arith.sitofp %67 : vector<16x32xi32> to vector<16x32xf32>
    %c12_i32_21 = arith.constant 12 : i32
    %69 = vector.broadcast %c12_i32_21 : i32 to vector<16x32xi32>
    %70 = arith.cmpi sge, %47, %69 : vector<16x32xi32>
    %c16_i32 = arith.constant 16 : i32
    %71 = vector.broadcast %c16_i32 : i32 to vector<16x32xi32>
    %72 = arith.cmpi slt, %47, %71 : vector<16x32xi32>
    %73 = arith.andi %70, %72 : vector<16x32xi1>
    %74 = arith.extui %73 : vector<16x32xi1> to vector<16x32xi32>
    %75 = arith.sitofp %74 : vector<16x32xi32> to vector<16x32xf32>
    %c16_i32_22 = arith.constant 16 : i32
    %76 = vector.broadcast %c16_i32_22 : i32 to vector<16x32xi32>
    %77 = arith.cmpi sge, %47, %76 : vector<16x32xi32>
    %c20_i32 = arith.constant 20 : i32
    %78 = vector.broadcast %c20_i32 : i32 to vector<16x32xi32>
    %79 = arith.cmpi slt, %47, %78 : vector<16x32xi32>
    %80 = arith.andi %77, %79 : vector<16x32xi1>
    %81 = arith.extui %80 : vector<16x32xi1> to vector<16x32xi32>
    %82 = arith.sitofp %81 : vector<16x32xi32> to vector<16x32xf32>
    %c20_i32_23 = arith.constant 20 : i32
    %83 = vector.broadcast %c20_i32_23 : i32 to vector<16x32xi32>
    %84 = arith.cmpi sge, %47, %83 : vector<16x32xi32>
    %c24_i32 = arith.constant 24 : i32
    %85 = vector.broadcast %c24_i32 : i32 to vector<16x32xi32>
    %86 = arith.cmpi slt, %47, %85 : vector<16x32xi32>
    %87 = arith.andi %84, %86 : vector<16x32xi1>
    %88 = arith.extui %87 : vector<16x32xi1> to vector<16x32xi32>
    %89 = arith.sitofp %88 : vector<16x32xi32> to vector<16x32xf32>
    %c24_i32_24 = arith.constant 24 : i32
    %90 = vector.broadcast %c24_i32_24 : i32 to vector<16x32xi32>
    %91 = arith.cmpi sge, %47, %90 : vector<16x32xi32>
    %c28_i32 = arith.constant 28 : i32
    %92 = vector.broadcast %c28_i32 : i32 to vector<16x32xi32>
    %93 = arith.cmpi slt, %47, %92 : vector<16x32xi32>
    %94 = arith.andi %91, %93 : vector<16x32xi1>
    %95 = arith.extui %94 : vector<16x32xi1> to vector<16x32xi32>
    %96 = arith.sitofp %95 : vector<16x32xi32> to vector<16x32xf32>
    %c28_i32_25 = arith.constant 28 : i32
    %97 = vector.broadcast %c28_i32_25 : i32 to vector<16x32xi32>
    %98 = arith.cmpi sge, %47, %97 : vector<16x32xi32>
    %c32_i32 = arith.constant 32 : i32
    %99 = vector.broadcast %c32_i32 : i32 to vector<16x32xi32>
    %100 = arith.cmpi slt, %47, %99 : vector<16x32xi32>
    %101 = arith.andi %98, %100 : vector<16x32xi1>
    %102 = arith.extui %101 : vector<16x32xi1> to vector<16x32xi32>
    %103 = arith.sitofp %102 : vector<16x32xi32> to vector<16x32xf32>
    %104 = tpu.concatenate %54, %61, %68, %75, %82, %89, %96, %103 in 0 : vector<16x32xf32>, vector<16x32xf32>, vector<16x32xf32>, vector<16x32xf32>, vector<16x32xf32>, vector<16x32xf32>, vector<16x32xf32>, vector<16x32xf32> -> vector<128x32xf32>
    %105 = tpu.concatenate %46, %46, %46, %46, %46, %46, %46, %46 in 0 : vector<16x32xf32>, vector<16x32xf32>, vector<16x32xf32>, vector<16x32xf32>, vector<16x32xf32>, vector<16x32xf32>, vector<16x32xf32>, vector<16x32xf32> -> vector<128x32xf32>
    %106 = arith.mulf %105, %104 : vector<128x32xf32>
    %c12 = arith.constant 12 : index
    %c0_26 = arith.constant 0 : index
    %107 = vector.load %arg5[%c12, %c0_26] : memref<16x32xf32, #tpu.memory_space<vmem>>, vector<1x32xf32>
    %108 = vector.broadcast %107 : vector<1x32xf32> to vector<128x32xf32>
    %109 = arith.mulf %106, %108 : vector<128x32xf32>
    %cst_27 = arith.constant dense<0.000000e+00> : vector<128xf32>
    %110 = vector.multi_reduction <add>, %109, %cst_27 [1] : vector<128x32xf32> to vector<128xf32>
    %111 = vector.shape_cast %110 : vector<128xf32> to vector<128x1xf32>
    %c11 = arith.constant 11 : index
    %c0_28 = arith.constant 0 : index
    %112 = vector.load %arg5[%c11, %c0_28] : memref<16x32xf32, #tpu.memory_space<vmem>>, vector<1x32xf32>
    %113 = vector.broadcast %112 : vector<1x32xf32> to vector<16x32xf32>
    %114 = arith.mulf %46, %113 : vector<16x32xf32>
    "tpu.trace_start"() <{level = 10 : i32, message = "rc,jc->rj"}> : () -> ()
    %cst_29 = arith.constant dense<0.000000e+00> : vector<128x16xf32>
    %115 = tpu.matmul %104, %114, %cst_29 {dimension_numbers = #tpu.dot_dimension_numbers<[1], [1], [0], [0], [0, 0, 1, 0], [], []>} : vector<128x32xf32>, vector<16x32xf32>, vector<128x16xf32> -> vector<128x16xf32>
    "tpu.trace_stop"() : () -> ()
    %116 = vector.broadcast %111 : vector<128x1xf32> to vector<128x16xf32>
    %117 = arith.addf %116, %115 : vector<128x16xf32>
    %cst_30 = arith.constant 0.000000e+00 : f32
    %118 = vector.broadcast %cst_30 : f32 to vector<128x16xf32>
    %119 = arith.cmpf oge, %117, %118 : vector<128x16xf32>
    %cst_31 = arith.constant 2.000000e-01 : f32
    %120 = vector.broadcast %cst_31 : f32 to vector<128x16xf32>
    %121 = arith.mulf %120, %117 : vector<128x16xf32>
    %122 = arith.select %119, %117, %121 : vector<128x16xi1>, vector<128x16xf32>
    %123 = tpu.concatenate %36, %36, %36, %36, %36, %36, %36, %36 in 0 : vector<16x16xf32>, vector<16x16xf32>, vector<16x16xf32>, vector<16x16xf32>, vector<16x16xf32>, vector<16x16xf32>, vector<16x16xf32>, vector<16x16xf32> -> vector<128x16xf32>
    %124 = arith.addf %122, %123 : vector<128x16xf32>
    %cst_32 = arith.constant dense<0xFF800000> : vector<128xf32>
    %125 = vector.multi_reduction <maximumf>, %124, %cst_32 [1] : vector<128x16xf32> to vector<128xf32>
    %126 = vector.shape_cast %125 : vector<128xf32> to vector<128x1xf32>
    %127 = vector.broadcast %126 : vector<128x1xf32> to vector<128x16xf32>
    %128 = arith.subf %124, %127 : vector<128x16xf32>
    %129 = math.exp %128 : vector<128x16xf32>
    %cst_33 = arith.constant dense<0.000000e+00> : vector<128xf32>
    %130 = vector.multi_reduction <add>, %129, %cst_33 [1] : vector<128x16xf32> to vector<128xf32>
    %131 = vector.shape_cast %130 : vector<128xf32> to vector<128x1xf32>
    %132 = tpu.reciprocal %131 {approx = true} : vector<128x1xf32> -> vector<128x1xf32>
    %133 = vector.broadcast %132 : vector<128x1xf32> to vector<128x16xf32>
    %134 = arith.mulf %129, %133 : vector<128x16xf32>
    %cst_34 = arith.constant dense<0.000000e+00> : vector<128x32xf32>
    %135 = tpu.matmul %134, %46, %cst_34 {dimension_numbers = #tpu.dot_dimension_numbers<[1], [0], [0], [1], [0, 0, 1, 1], [], []>} : vector<128x16xf32>, vector<16x32xf32>, vector<128x32xf32> -> vector<128x32xf32>
    %136 = arith.mulf %135, %104 : vector<128x32xf32>
    %137 = vector.extract_strided_slice %136 {offsets = [0, 0], sizes = [16, 32], strides = [1, 1]} : vector<128x32xf32> to vector<16x32xf32>
    %138 = vector.extract_strided_slice %136 {offsets = [16, 0], sizes = [16, 32], strides = [1, 1]} : vector<128x32xf32> to vector<16x32xf32>
    %139 = arith.addf %137, %138 : vector<16x32xf32>
    %140 = vector.extract_strided_slice %136 {offsets = [32, 0], sizes = [16, 32], strides = [1, 1]} : vector<128x32xf32> to vector<16x32xf32>
    %141 = arith.addf %139, %140 : vector<16x32xf32>
    %142 = vector.extract_strided_slice %136 {offsets = [48, 0], sizes = [16, 32], strides = [1, 1]} : vector<128x32xf32> to vector<16x32xf32>
    %143 = arith.addf %141, %142 : vector<16x32xf32>
    %144 = vector.extract_strided_slice %136 {offsets = [64, 0], sizes = [16, 32], strides = [1, 1]} : vector<128x32xf32> to vector<16x32xf32>
    %145 = arith.addf %143, %144 : vector<16x32xf32>
    %146 = vector.extract_strided_slice %136 {offsets = [80, 0], sizes = [16, 32], strides = [1, 1]} : vector<128x32xf32> to vector<16x32xf32>
    %147 = arith.addf %145, %146 : vector<16x32xf32>
    %148 = vector.extract_strided_slice %136 {offsets = [96, 0], sizes = [16, 32], strides = [1, 1]} : vector<128x32xf32> to vector<16x32xf32>
    %149 = arith.addf %147, %148 : vector<16x32xf32>
    %150 = vector.extract_strided_slice %136 {offsets = [112, 0], sizes = [16, 32], strides = [1, 1]} : vector<128x32xf32> to vector<16x32xf32>
    %151 = arith.addf %149, %150 : vector<16x32xf32>
    %c1 = arith.constant 1 : index
    %c0_35 = arith.constant 0 : index
    %152 = vector.load %arg5[%c1, %c0_35] : memref<16x32xf32, #tpu.memory_space<vmem>>, vector<1x32xf32>
    %153 = vector.broadcast %152 : vector<1x32xf32> to vector<16x32xf32>
    %154 = arith.mulf %151, %153 : vector<16x32xf32>
    %c2 = arith.constant 2 : index
    %c0_36 = arith.constant 0 : index
    %155 = vector.load %arg5[%c2, %c0_36] : memref<16x32xf32, #tpu.memory_space<vmem>>, vector<1x32xf32>
    %156 = vector.broadcast %155 : vector<1x32xf32> to vector<16x32xf32>
    %157 = arith.addf %154, %156 : vector<16x32xf32>
    %cst_37 = arith.constant 0.000000e+00 : f32
    %158 = vector.broadcast %cst_37 : f32 to vector<16x32xf32>
    %159 = arith.maximumf %157, %158 : vector<16x32xf32>
    %160 = arith.addf %159, %44 : vector<16x32xf32>
    %cst_38 = arith.constant dense<0.000000e+00> : vector<16x32xf32>
    %161 = tpu.matmul %20, %160, %cst_38 {dimension_numbers = #tpu.dot_dimension_numbers<[1], [0], [0], [1], [0, 0, 1, 1], [], []>} : vector<16x16xf32>, vector<16x32xf32>, vector<16x32xf32> -> vector<16x32xf32>
    %162 = tpu.concatenate %161, %160 in 1 : vector<16x32xf32>, vector<16x32xf32> -> vector<16x64xf32>
    %c48 = arith.constant 48 : index
    %c0_39 = arith.constant 0 : index
    %163 = vector.load %arg4[%c48, %c0_39] : memref<440x32xf32, #tpu.memory_space<vmem>>, vector<64x32xf32>
    %cst_40 = arith.constant dense<0.000000e+00> : vector<16x32xf32>
    %164 = tpu.matmul %162, %163, %cst_40 {dimension_numbers = #tpu.dot_dimension_numbers<[1], [0], [0], [1], [0, 0, 1, 1], [], []>} : vector<16x64xf32>, vector<64x32xf32>, vector<16x32xf32> -> vector<16x32xf32>
    %c3 = arith.constant 3 : index
    %c0_41 = arith.constant 0 : index
    %165 = vector.load %arg5[%c3, %c0_41] : memref<16x32xf32, #tpu.memory_space<vmem>>, vector<1x32xf32>
    %166 = vector.broadcast %165 : vector<1x32xf32> to vector<16x32xf32>
    %167 = arith.addf %164, %166 : vector<16x32xf32>
    %cst_42 = arith.constant 0.000000e+00 : f32
    %168 = vector.broadcast %cst_42 : f32 to vector<16x32xf32>
    %169 = arith.maximumf %167, %168 : vector<16x32xf32>
    %170 = arith.addf %169, %160 : vector<16x32xf32>
    %cst_43 = arith.constant dense<0.000000e+00> : vector<16x32xf32>
    %171 = tpu.matmul %20, %170, %cst_43 {dimension_numbers = #tpu.dot_dimension_numbers<[1], [0], [0], [1], [0, 0, 1, 1], [], []>} : vector<16x16xf32>, vector<16x32xf32>, vector<16x32xf32> -> vector<16x32xf32>
    %172 = tpu.concatenate %171, %170 in 1 : vector<16x32xf32>, vector<16x32xf32> -> vector<16x64xf32>
    %c112 = arith.constant 112 : index
    %c0_44 = arith.constant 0 : index
    %173 = vector.load %arg4[%c112, %c0_44] : memref<440x32xf32, #tpu.memory_space<vmem>>, vector<64x32xf32>
    %cst_45 = arith.constant dense<0.000000e+00> : vector<16x32xf32>
    %174 = tpu.matmul %172, %173, %cst_45 {dimension_numbers = #tpu.dot_dimension_numbers<[1], [0], [0], [1], [0, 0, 1, 1], [], []>} : vector<16x64xf32>, vector<64x32xf32>, vector<16x32xf32> -> vector<16x32xf32>
    %c4 = arith.constant 4 : index
    %c0_46 = arith.constant 0 : index
    %175 = vector.load %arg5[%c4, %c0_46] : memref<16x32xf32, #tpu.memory_space<vmem>>, vector<1x32xf32>
    %176 = vector.broadcast %175 : vector<1x32xf32> to vector<16x32xf32>
    %177 = arith.addf %174, %176 : vector<16x32xf32>
    %c176 = arith.constant 176 : index
    %c0_47 = arith.constant 0 : index
    %178 = vector.load %arg4[%c176, %c0_47] : memref<440x32xf32, #tpu.memory_space<vmem>>, vector<32x32xf32>
    %cst_48 = arith.constant dense<0.000000e+00> : vector<16x32xf32>
    %179 = tpu.matmul %177, %178, %cst_48 {dimension_numbers = #tpu.dot_dimension_numbers<[1], [0], [0], [1], [0, 0, 1, 1], [], []>} : vector<16x32xf32>, vector<32x32xf32>, vector<16x32xf32> -> vector<16x32xf32>
    %c5 = arith.constant 5 : index
    %c0_49 = arith.constant 0 : index
    %180 = vector.load %arg5[%c5, %c0_49] : memref<16x32xf32, #tpu.memory_space<vmem>>, vector<1x32xf32>
    %181 = vector.broadcast %180 : vector<1x32xf32> to vector<16x32xf32>
    %182 = arith.addf %179, %181 : vector<16x32xf32>
    %cst_50 = arith.constant 0.000000e+00 : f32
    %183 = vector.broadcast %cst_50 : f32 to vector<16x32xf32>
    %184 = arith.maximumf %182, %183 : vector<16x32xf32>
    %c208 = arith.constant 208 : index
    %c0_51 = arith.constant 0 : index
    %185 = vector.load %arg4[%c208, %c0_51] : memref<440x32xf32, #tpu.memory_space<vmem>>, vector<32x32xf32>
    %cst_52 = arith.constant dense<0.000000e+00> : vector<16x32xf32>
    %186 = tpu.matmul %184, %185, %cst_52 {dimension_numbers = #tpu.dot_dimension_numbers<[1], [0], [0], [1], [0, 0, 1, 1], [], []>} : vector<16x32xf32>, vector<32x32xf32>, vector<16x32xf32> -> vector<16x32xf32>
    %c6 = arith.constant 6 : index
    %c0_53 = arith.constant 0 : index
    %187 = vector.load %arg5[%c6, %c0_53] : memref<16x32xf32, #tpu.memory_space<vmem>>, vector<1x32xf32>
    %188 = vector.broadcast %187 : vector<1x32xf32> to vector<16x32xf32>
    %189 = arith.addf %186, %188 : vector<16x32xf32>
    %cst_54 = arith.constant 0.000000e+00 : f32
    %190 = vector.broadcast %cst_54 : f32 to vector<16x32xf32>
    %191 = arith.maximumf %189, %190 : vector<16x32xf32>
    %192 = tpu.concatenate %177, %191 in 1 : vector<16x32xf32>, vector<16x32xf32> -> vector<16x64xf32>
    %c240 = arith.constant 240 : index
    %c0_55 = arith.constant 0 : index
    %193 = vector.load %arg4[%c240, %c0_55] : memref<440x32xf32, #tpu.memory_space<vmem>>, vector<64x32xf32>
    %cst_56 = arith.constant dense<0.000000e+00> : vector<16x32xf32>
    %194 = tpu.matmul %192, %193, %cst_56 {dimension_numbers = #tpu.dot_dimension_numbers<[1], [0], [0], [1], [0, 0, 1, 1], [], []>} : vector<16x64xf32>, vector<64x32xf32>, vector<16x32xf32> -> vector<16x32xf32>
    %c7 = arith.constant 7 : index
    %c0_57 = arith.constant 0 : index
    %195 = vector.load %arg5[%c7, %c0_57] : memref<16x32xf32, #tpu.memory_space<vmem>>, vector<1x32xf32>
    %196 = vector.broadcast %195 : vector<1x32xf32> to vector<16x32xf32>
    %197 = arith.addf %194, %196 : vector<16x32xf32>
    %198 = tpu.concatenate %177, %197 in 1 : vector<16x32xf32>, vector<16x32xf32> -> vector<16x64xf32>
    %c0_58 = arith.constant 0 : index
    %c0_59 = arith.constant 0 : index
    %199 = vector.load %arg6[%c0_58, %c0_59] : memref<16x64xf32, #tpu.memory_space<vmem>>, vector<16x64xf32>
    tpu.vector_store %arg6[%c0_58, %c0_59], %198 {strides = array<i32>} : memref<16x64xf32, #tpu.memory_space<vmem>>, vector<16x64xf32>,
    %cst_60 = arith.constant dense<0.000000e+00> : vector<64x32xf32>
    %200 = tpu.matmul %5, %177, %cst_60 {dimension_numbers = #tpu.dot_dimension_numbers<[1], [0], [0], [1], [0, 0, 1, 1], [], []>} : vector<64x16xf32>, vector<16x32xf32>, vector<64x32xf32> -> vector<64x32xf32>
    %201 = vector.extract_strided_slice %200 {offsets = [0, 0], sizes = [32, 32], strides = [1, 1]} : vector<64x32xf32> to vector<32x32xf32>
    %c304 = arith.constant 304 : index
    %c0_61 = arith.constant 0 : index
    %202 = vector.load %arg4[%c304, %c0_61] : memref<440x32xf32, #tpu.memory_space<vmem>>, vector<32x32xf32>
    %cst_62 = arith.constant dense<0.000000e+00> : vector<32x32xf32>
    %203 = tpu.matmul %201, %202, %cst_62 {dimension_numbers = #tpu.dot_dimension_numbers<[1], [0], [0], [1], [0, 0, 1, 1], [], []>} : vector<32x32xf32>, vector<32x32xf32>, vector<32x32xf32> -> vector<32x32xf32>
    %204 = vector.extract_strided_slice %200 {offsets = [32, 0], sizes = [32, 32], strides = [1, 1]} : vector<64x32xf32> to vector<32x32xf32>
    %c336 = arith.constant 336 : index
    %c0_63 = arith.constant 0 : index
    %205 = vector.load %arg4[%c336, %c0_63] : memref<440x32xf32, #tpu.memory_space<vmem>>, vector<32x32xf32>
    %cst_64 = arith.constant dense<0.000000e+00> : vector<32x32xf32>
    %206 = tpu.matmul %204, %205, %cst_64 {dimension_numbers = #tpu.dot_dimension_numbers<[1], [0], [0], [1], [0, 0, 1, 1], [], []>} : vector<32x32xf32>, vector<32x32xf32>, vector<32x32xf32> -> vector<32x32xf32>
    %207 = arith.addf %203, %206 : vector<32x32xf32>
    %c0_65 = arith.constant 0 : index
    %c0_66 = arith.constant 0 : index
    %208 = vector.load %arg3[%c0_65, %c0_66] : memref<32x8xf32, #tpu.memory_space<vmem>>, vector<32x8xf32>
    %c368 = arith.constant 368 : index
    %c0_67 = arith.constant 0 : index
    %209 = vector.load %arg4[%c368, %c0_67] : memref<440x32xf32, #tpu.memory_space<vmem>>, vector<8x32xf32>
    %cst_68 = arith.constant dense<0.000000e+00> : vector<32x32xf32>
    %210 = tpu.matmul %208, %209, %cst_68 {dimension_numbers = #tpu.dot_dimension_numbers<[1], [0], [0], [1], [0, 0, 1, 1], [], []>} : vector<32x8xf32>, vector<8x32xf32>, vector<32x32xf32> -> vector<32x32xf32>
    %211 = arith.addf %207, %210 : vector<32x32xf32>
    %c8 = arith.constant 8 : index
    %c0_69 = arith.constant 0 : index
    %212 = vector.load %arg5[%c8, %c0_69] : memref<16x32xf32, #tpu.memory_space<vmem>>, vector<1x32xf32>
    %213 = vector.broadcast %212 : vector<1x32xf32> to vector<32x32xf32>
    %214 = arith.addf %211, %213 : vector<32x32xf32>
    %cst_70 = arith.constant 0.000000e+00 : f32
    %215 = vector.broadcast %cst_70 : f32 to vector<32x32xf32>
    %216 = arith.maximumf %214, %215 : vector<32x32xf32>
    %c376 = arith.constant 376 : index
    %c0_71 = arith.constant 0 : index
    %217 = vector.load %arg4[%c376, %c0_71] : memref<440x32xf32, #tpu.memory_space<vmem>>, vector<32x32xf32>
    %cst_72 = arith.constant dense<0.000000e+00> : vector<32x32xf32>
    %218 = tpu.matmul %216, %217, %cst_72 {dimension_numbers = #tpu.dot_dimension_numbers<[1], [0], [0], [1], [0, 0, 1, 1], [], []>} : vector<32x32xf32>, vector<32x32xf32>, vector<32x32xf32> -> vector<32x32xf32>
    %c9 = arith.constant 9 : index
    %c0_73 = arith.constant 0 : index
    %219 = vector.load %arg5[%c9, %c0_73] : memref<16x32xf32, #tpu.memory_space<vmem>>, vector<1x32xf32>
    %220 = vector.broadcast %219 : vector<1x32xf32> to vector<32x32xf32>
    %221 = arith.addf %218, %220 : vector<32x32xf32>
    %cst_74 = arith.constant 0.000000e+00 : f32
    %222 = vector.broadcast %cst_74 : f32 to vector<32x32xf32>
    %223 = arith.maximumf %221, %222 : vector<32x32xf32>
    %c408 = arith.constant 408 : index
    %c0_75 = arith.constant 0 : index
    %224 = vector.load %arg4[%c408, %c0_75] : memref<440x32xf32, #tpu.memory_space<vmem>>, vector<32x1xf32>
    %cst_76 = arith.constant dense<0.000000e+00> : vector<32x1xf32>
    %225 = tpu.matmul %223, %224, %cst_76 {dimension_numbers = #tpu.dot_dimension_numbers<[1], [0], [0], [1], [0, 0, 1, 1], [], []>} : vector<32x32xf32>, vector<32x1xf32>, vector<32x1xf32> -> vector<32x1xf32>
    %c10 = arith.constant 10 : index
    %c0_77 = arith.constant 0 : index
    %226 = vector.load %arg5[%c10, %c0_77] : memref<16x32xf32, #tpu.memory_space<vmem>>, vector<1x1xf32>
    %227 = vector.broadcast %226 : vector<1x1xf32> to vector<32x1xf32>
    %228 = arith.addf %225, %227 : vector<32x1xf32>
    %c0_78 = arith.constant 0 : index
    %c0_79 = arith.constant 0 : index
    %229 = vector.load %arg7[%c0_78, %c0_79] : memref<32x1xf32, #tpu.memory_space<vmem>>, vector<32x1xf32>
    tpu.vector_store %arg7[%c0_78, %c0_79], %228 {strides = array<i32>} : memref<32x1xf32, #tpu.memory_space<vmem>>, vector<32x1xf32>,
    return
  }
}

</mosaic_0001>

<bundles_post_ra>
// kernel: forward.1
= control target key start
LH: loop header
LB: loop body
LE: loop exit
PB: predicated region body
PF: predicated region fallthrough
CT: control target
= control target key end

     0   :  { %v1677_v0 = vmov 0   ;;  %v33_v5 = vlaneseq  ;;  %v1678_v9 = vmov 1.0   ;;  %v1679_v14 = vmov 0.0   ;;  %s1680_s11 = smov 32   ;;  %s2509_s1 = inlined_call_operand.vmem [shape: s32[64,1], index: 1, kind: input, shape index: {}]   ;;  %s2510_s2 = inlined_call_operand.vmem [shape: s32[1,32], index: 2, kind: input, shape index: {}]   ;;  %s2511_s4 = inlined_call_operand.vmem [shape: f32[440,32], index: 4, kind: input, shape index: {}]   ;;  %s2512_s0 = inlined_call_operand.vmem [shape: f32[16,16], index: 0, kind: input, shape index: {}]   ;;  %s2513_s5 = inlined_call_operand.vmem [shape: f32[16,32], index: 5, kind: input, shape index: {}]   ;;  %s2514_s3 = inlined_call_operand.vmem [shape: f32[32,8], index: 3, kind: input, shape index: {}]   ;;  %s2515_s6 = inlined_call_operand.vmem [shape: f32[16,64], index: 6, kind: output, shape index: {0}]   ;;  %s2516_s7 = inlined_call_operand.vmem [shape: f32[32,1], index: 7, kind: output, shape index: {1}]  }
   0x1   :  { %1589 = vset.pattern.permute.xlu1 %v1677_v0  ;;  %1588 = vset.pattern.permute.xlu0 %v1677_v0  ;;  %v28_v1 = vld [vmem:[%s2509_s1 + $0x18] sm:$0xff]  ;;  %v26_v2 = vld [vmem:[%s2509_s1 + $0x8] sm:$0xff]  ;;  %v27_v3 = vld [vmem:[%s2509_s1 + $0x10] sm:$0xff]  ;;  %vm94_vm4 = vcmask 261120   ;;  %vm2521_vm7 = vcmask 130048  }
   0x2   :  { %45 = vperm.xlu0 %1588, %v28_v1   ;;  %39 = vperm.xlu1 %1589, %v26_v2   ;;  %v25_v4 = vld [vmem:[%s2509_s1] sm:$0xff]  ;;  %v1733_v6 = vand.u32 127, %v33_v5  ;;  %v1744_v10 = vshrl.u32 %v33_v5, 7  ;;  %v162_v17 = vld [vmem:[%s2511_s4 + $0x8] sm:$0xff]  ;;  %v197_v24 = vld [vmem:[%s2511_s4 + $0x18] sm:$0xff] }
   0x3   :  { %1590 = vset.pattern.permute.xlu2 %v1677_v0  ;;  %v1591_v11 = vld [vmem:[%s2510_s2] ss:$0 sm:$0xff]  ;;  %v160_v21 = vld [vmem:[%s2512_s0 + $0x8] sm:$0xff]  ;;  %v196_v25 = vld [vmem:[%s2511_s4 + $0x10] sm:$0xff] }
   0x4   :  { %vm88_vm2 = vcmp.eq.s32.totalorder %v1744_v10, %v1591_v11  ;;  %v1768_v16 = vadd.s32 8, %v1744_v10  ;;  %v161_v18 = vld [vmem:[%s2511_s4] sm:$0xff]  ;;  %v199_v22 = vld [vmem:[%s2511_s4 + $0x28] sm:$0xff]  ;;  %vm234_vm8 = vcmp.ge.s32.totalorder %v1733_v6, 4  ;;  %vm235_vm9 = vcmp.lt.s32.totalorder %v1733_v6, 8 }
   0x5   :  { %v1486_v15 = vsel %vm88_vm2, 1.0, %v1679_v14  ;;  %v159_v20 = vld [vmem:[%s2512_s0] sm:$0xff]  ;;  %218 = vmatpush.msra.mxu2 %v199_v22  ;;  %vm254_vm10 = vcmp.ge.s32.totalorder %v1733_v6, 20  ;;  %vm255_vm11 = vcmp.lt.s32.totalorder %v1733_v6, 24  ;;  %vm259_vm12 = vcmp.ge.s32.totalorder %v1733_v6, 24  ;;  %vm236_vm14 = vmand %vm234_vm8, %vm235_vm9 }
   0x6   :  { %vm89_vm6 = vcmp.eq.s32.totalorder %v1768_v16, %v1591_v11  ;;  %v198_v23 = vld [vmem:[%s2511_s4 + $0x20] sm:$0xff]  ;;  %vm260_vm13 = vcmp.lt.s32.totalorder %v1733_v6, 28  ;;  %vm264_vm15 = vcmp.ge.s32.totalorder %v1733_v6, 28  ;;  %vm265_vm2 = vcmp.lt.s32.totalorder %v1733_v6, 32  ;;  %v1842_v37 = vld [vmem:[%s2513_s5 + $0xc] ss:$0 sm:$0xff] }
   0x7   :  { %v1487_v19 = vsel %vm89_vm6, 1.0, %v1679_v14  ;;  %219 = vmatpush.msra.mxu2 %v198_v23  ;;  %v1592_v28 = vld [vmem:[%s2513_s5] ss:$0 sm:$0xff]  ;;  %vm230_vm6 = vcmp.lt.s32.totalorder %v1733_v6, 4  ;;  %v1834_v35 = vsel %vm236_vm14, 1.0, %v1679_v14  ;;  %vm2522_vm14 = vcmask 130048  }
   0x8   :  { %v1837_v36 = vsel %vm230_vm6, 1.0, %v1679_v14  ;;  %v1594_v56 = vld [vmem:[%s2513_s5 + $0xb] ss:$0 sm:$0xff]  ;;  %vm2523_vm6 = vmmov %vm2522_vm14 }
   0x9   :  { %220 = vmatpush.msra.mxu2 %v197_v24 }
   0xa   :  { %42 = vperm.xlu0 %1588, %v27_v3   ;;  %36 = vperm.xlu1 %1589, %v25_v4  }
   0xb   :  { %221 = vmatpush.msra.mxu2 %v196_v25 }
  0x74   :  { %v1735_v7 = vpop.permute.xlu0 %45  ;;  %v1737_v8 = vpop.permute.xlu1 %39 }
  0x75   :  { %vm2517_vm0 = vcmp.eq.s32.totalorder %v1733_v6, %v1735_v7  ;;  %vm2519_vm3 = vcmp.eq.s32.totalorder %v1733_v6, %v1737_v8 }
  0x76   :  { %1488 = vmatpush.msk.msra.mxu0 %vm2517_vm0, %v1678_v9  ;;  %vm256_vm0 = vmand %vm254_vm10, %vm255_vm11  ;;  %vm137_vm10 = vcmp.eq.s32.totalorder %v1744_v10, %v1733_v6  ;;  %vm138_vm11 = vcmp.eq.s32.totalorder %v1768_v16, %v1733_v6 }
  0x77   :  { %v1845_v38 = vsel %vm256_vm0, 1.0, %v1679_v14  ;;  %vm239_vm0 = vcmp.ge.s32.totalorder %v1733_v6, 8 }
  0x7c   :  { %v1749_v12 = vpop.permute.xlu0 %42  ;;  %v1754_v13 = vpop.permute.xlu1 %36 }
  0x7d   :  { %vm2518_vm1 = vcmp.eq.s32.totalorder %v1733_v6, %v1749_v12  ;;  %vm2520_vm5 = vcmp.eq.s32.totalorder %v1733_v6, %v1754_v13 }
  0x7e   :  { %1489 = vmatpush.msk.msra.mxu0 %vm2518_vm1, %v1678_v9  ;;  %vm249_vm1 = vcmp.ge.s32.totalorder %v1733_v6, 16 }
  0x80   :  { %1490 = vmatpush.msk.msra.mxu0 %vm2519_vm3, %v1678_v9  ;;  %vm250_vm3 = vcmp.lt.s32.totalorder %v1733_v6, 20 }
  0x81   :  { %vm251_vm8 = vmand %vm249_vm1, %vm250_vm3  ;;  %vm240_vm1 = vcmp.lt.s32.totalorder %v1733_v6, 12 }
  0x82   :  { %1491 = vmatpush.msk.msra.mxu0 %vm2520_vm5, %v1678_v9  ;;  %vm261_vm5 = vmand %vm259_vm12, %vm260_vm13  ;;  %v1856_v44 = vsel %vm251_vm8, 1.0, %v1679_v14 }
  0x83   :  { %1492 = vmatmul.msk.f32.vlgmr.msra.gmra.mxu0 %vm94_vm4, %v1486_v15  ;;  %v1848_v39 = vsel %vm261_vm5, 1.0, %v1679_v14  ;;  %vm241_vm3 = vmand %vm239_vm0, %vm240_vm1  ;;  %vm244_vm5 = vcmp.ge.s32.totalorder %v1733_v6, 12 }
  0x84   :  { %185 = vmatpush.msrb.mxu0 %v162_v17  ;;  %v1893_v0 = vsel %vm241_vm3, 1.0, %v1679_v14  ;;  %vm2524_vm0 = vmmov %vm2523_vm6 }
  0x85   :  { %vm2525_vm3 = vmmov %vm2524_vm0 }
  0x86   :  { %186 = vmatpush.msrb.mxu0 %v161_v18 }
  0x8b   :  { %1493 = vmatmul.msk.f32.gmra.mxu0 %vm94_vm4, %v1487_v19 }
  0x93   :  { %1496 = vmatmul.msk.f32.vlgmr.msrb.gmra.mxu0 %vm2521_vm7, %v159_v20 }
  0x9b   :  { %1497 = vmatmul.msk.f32.gmra.mxu0 %vm2521_vm7, %v160_v21  ;;  %vm266_vm7 = vmand %vm264_vm15, %vm265_vm2 }
  0x9c   :  { %v1851_v41 = vsel %vm266_vm7, 1.0, %v1679_v14  ;;  %vm245_vm7 = vcmp.lt.s32.totalorder %v1733_v6, 16 }
  0x9d   :  { %vm246_vm9 = vmand %vm244_vm5, %vm245_vm7 }
  0x9e   :  { %v1906_v11 = vsel %vm246_vm9, 1.0, %v1679_v14  ;;  %vm2526_vm7 = vmmov %vm2524_vm0 }
 0x100   :  { %v1803_v26 = vpop.f32.mrf.mxu0 }
 0x108   :  { %v1805_v27 = vpop.f32.mrf.mxu0 }
 0x110   :  { %v188_v29 = vpop.f32.mrf.mxu0 }
 0x111   :  { %v1810_v30 = vadd.f32 %v1592_v28, %v188_v29 }
 0x113   :  { %v194_v31 = vmax.f32 %v1810_v30, 0.0 }
 0x115   :  { %1498 = vmatmul.msk.f32.vlgmr.msra.gmra.mxu2 %vm94_vm4, %v194_v31 }
 0x118   :  { %v191_v32 = vpop.f32.mrf.mxu0 }
 0x119   :  { %v1816_v33 = vadd.f32 %v1592_v28, %v191_v32  ;;  %v1494_v28 = vsel %vm137_vm10, 1.0, %v1679_v14  ;;  %vm2527_vm10 = vmmov %vm2524_vm0 }
 0x11a   :  { %v143_v29 = vsub.f32 1.0, %v1494_v28 }
 0x11b   :  { %v195_v34 = vmax.f32 %v1816_v33, 0.0  ;;  %v906_v33 = vld [vmem:[%s2511_s4 + $0x60] sm:$0xff] }
 0x11c   :  { %v145_v32 = vmul.f32 %v143_v29, %v1803_v26 }
 0x11d   :  { %1499 = vmatmul.msk.f32.gmra.mxu2 %vm94_vm4, %v195_v34 }
 0x198   :  { %v223_v40 = vpop.f32.mrf.mxu2 }
 0x199   :  { %v279_v42 = vmul.f32 %v1834_v35, %v223_v40  ;;  %v277_v43 = vmul.f32 %v1837_v36, %v223_v40  ;;  %v287_v45 = vmul.f32 %v1845_v38, %v223_v40  ;;  %v289_v46 = vmul.f32 %v1848_v39, %v223_v40 }
 0x19a   :  { %v291_v49 = vmul.f32 %v1851_v41, %v223_v40  ;;  %v285_v54 = vmul.f32 %v1856_v44, %v223_v40  ;;  %v361_v4 = vmul.f32 %v1594_v56, %v223_v40  ;;  %v281_v5 = vmul.f32 %v1893_v0, %v223_v40 }
 0x19b   :  { %v297_v47 = vmul.f32 %v1842_v37, %v279_v42  ;;  %v295_v48 = vmul.f32 %v1842_v37, %v277_v43  ;;  %v1866_v50 = vmul.f32 %v1842_v37, %v287_v45  ;;  %v1869_v51 = vmul.f32 %v1842_v37, %v289_v46 }
 0x19c   :  { %v1875_v55 = vmul.f32 %v1842_v37, %v291_v49  ;;  %v303_v59 = vmul.f32 %v1842_v37, %v285_v54  ;;  %v299_v9 = vmul.f32 %v1842_v37, %v281_v5  ;;  %v283_v17 = vmul.f32 %v1906_v11, %v223_v40 }
 0x19d   :  { %v317_v52 = vsel %vm94_vm4, %v297_v47, 0.0  ;;  %v311_v53 = vsel %vm94_vm4, %v295_v48, 0.0  ;;  %v147_v42 = vadd.f32 %v1494_v28, %v145_v32 }
 0x19e   :  { %318 = vadd.xlane.f32.xlu0 %v317_v52  ;;  %312 = vadd.xlane.f32.xlu2 %v311_v53  ;;  %v335_v1 = vsel %vm94_vm4, %v303_v59, 0.0  ;;  %v323_v15 = vsel %vm94_vm4, %v299_v9, 0.0  ;;  %v301_v18 = vmul.f32 %v1842_v37, %v283_v17 }
 0x19f   :  { %v151_v45 = vmax.f32 %v147_v42, 1e-30  ;;  %vm149_vm13 = vcmp.gt.f32.partialorder %v147_v42, 0.0 }
 0x1a0   :  { %v1880_v57 = vpop.f32.mrf.mxu2  ;;  %v329_v19 = vsel %vm94_vm4, %v301_v18, 0.0 }
 0x1a1   :  { %768 = vmatpush.msra.mxu1 %v1880_v57  ;;  %v362_v58 = vmul.f32 %v1594_v56, %v1880_v57  ;;  %v280_v60 = vmul.f32 %v1834_v35, %v1880_v57  ;;  %v278_v61 = vmul.f32 %v1837_v36, %v1880_v57  ;;  %v282_v20 = vmul.f32 %v1893_v0, %v1880_v57 }
 0x1a2   :  { %v284_v23 = vmul.f32 %v1906_v11, %v1880_v57  ;;  %1605 = vlog2.f32 %v151_v45 }
 0x1a3   :  { %1508 = vmatpush.xpose.msk.msra.mxu3 %vm94_vm4, %v362_v58  ;;  %769 = vmatpush.msra.mxu1 %v223_v40  ;;  %v298_v62 = vmul.f32 %v1842_v37, %v280_v60  ;;  %v296_v63 = vmul.f32 %v1842_v37, %v278_v61  ;;  %v300_v21 = vmul.f32 %v1842_v37, %v282_v20  ;;  %v1495_v40 = vsel %vm138_vm11, 1.0, %v1679_v14 }
 0x1a4   :  { %v302_v24 = vmul.f32 %v1842_v37, %v284_v23  ;;  %v144_v43 = vsub.f32 1.0, %v1495_v40 }
 0x1a5   :  { %v320_v2 = vsel %vm94_vm4, %v298_v62, 0.0  ;;  %v314_v3 = vsel %vm94_vm4, %v296_v63, 0.0  ;;  %v326_v22 = vsel %vm94_vm4, %v300_v21, 0.0 }
 0x1a6   :  { %336 = vadd.xlane.f32.xlu0 %v335_v1  ;;  %321 = vadd.xlane.f32.xlu1 %v320_v2  ;;  %v332_v25 = vsel %vm94_vm4, %v302_v24, 0.0  ;;  %v146_v10 = vmul.f32 %v144_v43, %v1805_v27 }
 0x1a7   :  { %315 = vadd.xlane.f32.xlu2 %v314_v3  ;;  %1509 = vmatpush.xpose.msk.msra.mxu3 %vm94_vm4, %v361_v4 }
 0x1a8   :  { %v148_v46 = vadd.f32 %v1495_v40, %v146_v10  ;;  %v1606_v48 = vpop.eup %1605 }
 0x1a9   :  { %v154_v52 = vmul.f32 0.6931472, %v1606_v48  ;;  %v341_v48 = vsel %vm94_vm4, %v1866_v50, 0.0 }
 0x1aa   :  { %1510 = vmatmul.msk.f32.vlgmr.msra.gmra.mxu3 %vm94_vm4, %v1837_v36  ;;  %v152_v47 = vmax.f32 %v148_v46, 1e-30  ;;  %vm150_vm2 = vcmp.gt.f32.partialorder %v148_v46, 0.0 }
 0x1ab   :  { %v1958_v56 = vsel %vm149_vm13, %v154_v52, -1e+30 }
 0x1ac   :  { %1607 = vlog2.f32 %v152_v47 }
 0x1af   :  { %324 = vadd.xlane.f32.xlu2 %v323_v15 }
 0x1b2   :  { %1511 = vmatmul.msk.f32.gmra.mxu3 %vm94_vm4, %v1837_v36  ;;  %v1608_v59 = vpop.eup %1607 }
 0x1b3   :  { %v156_v1 = vmul.f32 0.6931472, %v1608_v59 }
 0x1b5   :  { %v1965_v4 = vsel %vm150_vm2, %v156_v1, -1e+30  ;;  %vm2530_vm2 = vmmov %vm2524_vm0 }
 0x1b7   :  { %330 = vadd.xlane.f32.xlu2 %v329_v19  ;;  %v286_v19 = vmul.f32 %v1856_v44, %v1880_v57 }
 0x1b9   :  { %v304_v23 = vmul.f32 %v1842_v37, %v286_v19  ;;  %v290_v19 = vmul.f32 %v1848_v39, %v1880_v57 }
 0x1ba   :  { %1512 = vmatmul.msk.f32.gmra.mxu3 %vm94_vm4, %v1834_v35 }
 0x1bb   :  { %v338_v40 = vsel %vm94_vm4, %v304_v23, 0.0 }
 0x1bf   :  { %327 = vadd.xlane.f32.xlu2 %v326_v22 }
 0x1c2   :  { %1513 = vmatmul.msk.f32.gmra.mxu3 %vm94_vm4, %v1834_v35 }
 0x1c7   :  { %333 = vadd.xlane.f32.xlu2 %v332_v25 }
 0x1ca   :  { %1514 = vmatmul.msk.f32.gmra.mxu3 %vm94_vm4, %v1893_v0 }
 0x1d2   :  { %1515 = vmatmul.msk.f32.gmra.mxu3 %vm94_vm4, %v1893_v0 }
 0x1da   :  { %1516 = vmatmul.msk.f32.gmra.mxu3 %vm94_vm4, %v1906_v11 }
 0x1e2   :  { %1517 = vmatmul.msk.f32.gmra.mxu3 %vm94_vm4, %v1906_v11 }
 0x1ea   :  { %1518 = vmatmul.msk.f32.gmra.mxu3 %vm94_vm4, %v1856_v44 }
 0x1f2   :  { %1519 = vmatmul.msk.f32.gmra.mxu3 %vm94_vm4, %v1856_v44 }
 0x1fa   :  { %1520 = vmatmul.msk.f32.gmra.mxu3 %vm94_vm4, %v1845_v38 }
 0x202   :  { %1521 = vmatmul.msk.f32.gmra.mxu3 %vm94_vm4, %v1845_v38 }
 0x20a   :  { %1522 = vmatmul.msk.f32.gmra.mxu3 %vm94_vm4, %v1848_v39 }
 0x211   :  { %v313_v16 = vpop.xlane.xlu2 %312  ;;  %v319_v15 = vpop.xlane.xlu0 %318 }
 0x212   :  { %1523 = vmatmul.msk.f32.gmra.mxu3 %vm94_vm4, %v1848_v39 }
 0x219   :  { %v322_v28 = vpop.xlane.xlu1 %321 }
 0x21a   :  { %1524 = vmatmul.msk.f32.gmra.mxu3 %vm94_vm4, %v1851_v41  ;;  %v316_v61 = vpop.xlane.xlu2 %315 }
 0x222   :  { %1525 = vmatmul.msk.f32.gmra.mxu3 %vm94_vm4, %v1851_v41  ;;  %v325_v22 = vpop.xlane.xlu2 %324 }
 0x22a   :  { %v331_v10 = vpop.xlane.xlu2 %330 }
 0x22d   :  { %v402_v49 = vpop.f32.mrf.mxu3 }
 0x22e   :  { %v450_v53 = vadd.f32 %v402_v49, %v313_v16  ;;  %v288_v49 = vmul.f32 %v1845_v38, %v1880_v57 }
 0x230   :  { %vm466_vm12 = vcmp.ge.f32.partialorder %v450_v53, 0.0  ;;  %v482_v54 = vmul.f32 0.2, %v450_v53 }
 0x232   :  { %v498_v58 = vsel %vm466_vm12, %v450_v53, %v482_v54  ;;  %v306_v54 = vmul.f32 %v1842_v37, %v288_v49  ;;  %vm2528_vm12 = vmmov %vm2524_vm0  ;;  %v292_v49 = vmul.f32 %v1851_v41, %v1880_v57 }
 0x233   :  { %v1961_v60 = vadd.f32 %v498_v58, %v1958_v56 }
 0x234   :  { %v344_v50 = vsel %vm94_vm4, %v306_v54, 0.0  ;;  %v310_v54 = vmul.f32 %v1842_v37, %v292_v49 }
 0x235   :  { %v405_v62 = vpop.f32.mrf.mxu3  ;;  %v530_v63 = vsel %vm2522_vm14, %v1961_v60, -inf  ;;  %vm2529_vm14 = vmmov %vm2524_vm0 }
 0x236   :  { %v451_v2 = vadd.f32 %v405_v62, %v316_v61  ;;  %531 = vmax.xlane.f32.xlu2 %v530_v63  ;;  %v328_v61 = vpop.xlane.xlu2 %327 }
 0x238   :  { %vm467_vm15 = vcmp.ge.f32.partialorder %v451_v2, 0.0  ;;  %v483_v3 = vmul.f32 0.2, %v451_v2 }
 0x23a   :  { %v499_v5 = vsel %vm467_vm15, %v451_v2, %v483_v3 }
 0x23b   :  { %v1968_v9 = vadd.f32 %v499_v5, %v1965_v4 }
 0x23d   :  { %v408_v17 = vpop.f32.mrf.mxu3  ;;  %v533_v18 = vsel %vm2523_vm6, %v1968_v9, -inf  ;;  %vm2531_vm6 = vmmov %vm2524_vm0 }
 0x23e   :  { %v452_v20 = vadd.f32 %v408_v17, %v319_v15  ;;  %534 = vmax.xlane.f32.xlu2 %v533_v18  ;;  %v347_v17 = vsel %vm94_vm4, %v1869_v51, 0.0 }
 0x240   :  { %vm468_vm8 = vcmp.ge.f32.partialorder %v452_v20, 0.0  ;;  %v484_v21 = vmul.f32 0.2, %v452_v20 }
 0x242   :  { %v500_v24 = vsel %vm468_vm8, %v452_v20, %v484_v21 }
 0x243   :  { %v1976_v25 = vadd.f32 %v500_v24, %v1958_v56 }
 0x245   :  { %v411_v29 = vpop.f32.mrf.mxu3  ;;  %v536_v32 = vsel %vm2524_vm0, %v1976_v25, -inf }
 0x246   :  { %v453_v42 = vadd.f32 %v411_v29, %v322_v28  ;;  %537 = vmax.xlane.f32.xlu1 %v536_v32  ;;  %339 = vadd.xlane.f32.xlu2 %v338_v40  ;;  %v334_v28 = vpop.xlane.xlu2 %333 }
 0x248   :  { %vm469_vm1 = vcmp.ge.f32.partialorder %v453_v42, 0.0  ;;  %v485_v43 = vmul.f32 0.2, %v453_v42 }
 0x24a   :  { %v501_v45 = vsel %vm469_vm1, %v453_v42, %v485_v43  ;;  %vm2532_vm1 = vmmov %vm2524_vm0 }
 0x24b   :  { %v1982_v46 = vadd.f32 %v501_v45, %v1965_v4 }
 0x24d   :  { %v414_v47 = vpop.f32.mrf.mxu3  ;;  %v539_v16 = vsel %vm2525_vm3, %v1982_v46, -inf }
 0x24e   :  { %v454_v52 = vadd.f32 %v414_v47, %v325_v22  ;;  %342 = vadd.xlane.f32.xlu1 %v341_v48  ;;  %540 = vmax.xlane.f32.xlu0 %v539_v16  ;;  %v308_v22 = vmul.f32 %v1842_v37, %v290_v19  ;;  %v353_v48 = vsel %vm94_vm4, %v1875_v55, 0.0 }
 0x250   :  { %vm470_vm5 = vcmp.ge.f32.partialorder %v454_v52, 0.0  ;;  %v486_v53 = vmul.f32 0.2, %v454_v52  ;;  %v350_v51 = vsel %vm94_vm4, %v308_v22, 0.0 }
 0x252   :  { %v502_v58 = vsel %vm470_vm5, %v454_v52, %v486_v53  ;;  %vm2533_vm5 = vmmov %vm2524_vm0 }
 0x253   :  { %v1992_v59 = vadd.f32 %v502_v58, %v1958_v56 }
 0x255   :  { %v417_v62 = vpop.f32.mrf.mxu3  ;;  %v542_v63 = vsel %vm2526_vm7, %v1992_v59, -inf  ;;  %vm2534_vm7 = vmmov %vm2524_vm0 }
 0x256   :  { %v455_v1 = vadd.f32 %v417_v62, %v328_v61  ;;  %345 = vadd.xlane.f32.xlu0 %v344_v50  ;;  %543 = vmax.xlane.f32.xlu2 %v542_v63  ;;  %v356_v62 = vsel %vm94_vm4, %v310_v54, 0.0 }
 0x258   :  { %vm471_vm9 = vcmp.ge.f32.partialorder %v455_v1, 0.0  ;;  %v487_v2 = vmul.f32 0.2, %v455_v1 }
 0x25a   :  { %v503_v3 = vsel %vm471_vm9, %v455_v1, %v487_v2 }
 0x25b   :  { %v1998_v5 = vadd.f32 %v503_v3, %v1965_v4 }
 0x25d   :  { %v420_v15 = vpop.f32.mrf.mxu3  ;;  %v545_v18 = vsel %vm2527_vm10, %v1998_v5, -inf  ;;  %vm2535_vm10 = vmmov %vm2524_vm0 }
 0x25e   :  { %v456_v20 = vadd.f32 %v420_v15, %v331_v10  ;;  %348 = vadd.xlane.f32.xlu2 %v347_v17  ;;  %546 = vmax.xlane.f32.xlu1 %v545_v18  ;;  %v337_v10 = vpop.xlane.xlu0 %336 }
 0x260   :  { %vm472_vm11 = vcmp.ge.f32.partialorder %v456_v20, 0.0  ;;  %v488_v21 = vmul.f32 0.2, %v456_v20 }
 0x262   :  { %v504_v23 = vsel %vm472_vm11, %v456_v20, %v488_v21 }
 0x263   :  { %v2008_v24 = vadd.f32 %v504_v23, %v1958_v56 }
 0x265   :  { %v423_v29 = vpop.f32.mrf.mxu3  ;;  %v548_v32 = vsel %vm2528_vm12, %v2008_v24, -inf  ;;  %vm2536_vm12 = vmmov %vm2524_vm0 }
 0x266   :  { %v457_v40 = vadd.f32 %v423_v29, %v334_v28  ;;  %351 = vadd.xlane.f32.xlu2 %v350_v51  ;;  %549 = vmax.xlane.f32.xlu0 %v548_v32 }
 0x268   :  { %vm473_vm13 = vcmp.ge.f32.partialorder %v457_v40, 0.0  ;;  %v489_v42 = vmul.f32 0.2, %v457_v40 }
 0x26a   :  { %v505_v43 = vsel %vm473_vm13, %v457_v40, %v489_v42  ;;  %vm2537_vm13 = vmmov %vm2524_vm0 }
 0x26b   :  { %v2014_v45 = vadd.f32 %v505_v43, %v1965_v4 }
 0x26d   :  { %v426_v47 = vpop.f32.mrf.mxu3  ;;  %v551_v16 = vsel %vm2529_vm14, %v2014_v45, -inf }
 0x26e   :  { %v458_v52 = vadd.f32 %v426_v47, %v337_v10  ;;  %354 = vadd.xlane.f32.xlu2 %v353_v48  ;;  %552 = vmax.xlane.f32.xlu0 %v551_v16 }
 0x270   :  { %vm474_vm15 = vcmp.ge.f32.partialorder %v458_v52, 0.0  ;;  %v490_v53 = vmul.f32 0.2, %v458_v52 }
 0x272   :  { %v506_v58 = vsel %vm474_vm15, %v458_v52, %v490_v53  ;;  %vm2538_vm15 = vmmov %vm2524_vm0 }
 0x273   :  { %v2024_v61 = vadd.f32 %v506_v58, %v1958_v56 }
 0x275   :  { %v554_v55 = vsel %vm2530_vm2, %v2024_v61, -inf  ;;  %v429_v63 = vpop.f32.mrf.mxu3  ;;  %vm2539_vm2 = vmmov %vm2524_vm0 }
 0x276   :  { %357 = vadd.xlane.f32.xlu2 %v356_v62  ;;  %555 = vmax.xlane.f32.xlu0 %v554_v55 }
 0x27d   :  { %v432_v17 = vpop.f32.mrf.mxu3 }
 0x285   :  { %v435_v51 = vpop.f32.mrf.mxu3 }
 0x28d   :  { %v438_v54 = vpop.f32.mrf.mxu3 }
 0x2a9   :  { %v532_v50 = vpop.xlane.xlu2 %531 }
 0x2aa   :  { %v578_v57 = vsub.f32 %v1961_v60, %v532_v50 }
 0x2ac   :  { %v594_v1 = vmul.f32 1.442695, %v578_v57 }
 0x2ae   :  { %1609 = vpow2.f32 %v594_v1 }
 0x2b1   :  { %v535_v2 = vpop.xlane.xlu2 %534 }
 0x2b2   :  { %v579_v37 = vsub.f32 %v1968_v9, %v535_v2 }
 0x2b4   :  { %v2031_v3 = vpop.eup %1609  ;;  %v596_v15 = vmul.f32 1.442695, %v579_v37 }
 0x2b5   :  { %v626_v18 = vsel %vm2531_vm6, %v2031_v3, 0.0 }
 0x2b6   :  { %1611 = vpow2.f32 %v596_v15  ;;  %627 = vadd.xlane.f32.xlu1 %v626_v18 }
 0x2b9   :  { %v538_v19 = vpop.xlane.xlu1 %537  ;;  %v340_v20 = vpop.xlane.xlu2 %339 }
 0x2ba   :  { %v580_v21 = vsub.f32 %v1976_v25, %v538_v19  ;;  %v459_v60 = vadd.f32 %v429_v63, %v340_v20  ;;  %v441_v20 = vpop.f32.mrf.mxu3 }
 0x2bc   :  { %v2036_v22 = vpop.eup %1611  ;;  %v598_v23 = vmul.f32 1.442695, %v580_v21  ;;  %vm475_vm8 = vcmp.ge.f32.partialorder %v459_v60, 0.0  ;;  %v491_v28 = vmul.f32 0.2, %v459_v60 }
 0x2bd   :  { %v629_v9 = vsel %vm2524_vm0, %v2036_v22, 0.0 }
 0x2be   :  { %1613 = vpow2.f32 %v598_v23  ;;  %630 = vadd.xlane.f32.xlu1 %v629_v9  ;;  %v507_v29 = vsel %vm475_vm8, %v459_v60, %v491_v28  ;;  %vm2540_vm8 = vmmov %vm2524_vm0 }
 0x2bf   :  { %v2041_v32 = vadd.f32 %v507_v29, %v1965_v4 }
 0x2c1   :  { %v541_v40 = vpop.xlane.xlu0 %540  ;;  %v343_v42 = vpop.xlane.xlu1 %342  ;;  %v557_v25 = vsel %vm2532_vm1, %v2041_v32, -inf }
 0x2c2   :  { %v581_v43 = vsub.f32 %v1982_v46, %v541_v40  ;;  %v460_v10 = vadd.f32 %v432_v17, %v343_v42  ;;  %558 = vmax.xlane.f32.xlu0 %v557_v25 }
 0x2c4   :  { %v2046_v47 = vpop.eup %1613  ;;  %v600_v48 = vmul.f32 1.442695, %v581_v43  ;;  %vm476_vm3 = vcmp.ge.f32.partialorder %v460_v10, 0.0  ;;  %v492_v16 = vmul.f32 0.2, %v460_v10 }
 0x2c5   :  { %v632_v49 = vsel %vm2533_vm5, %v2046_v47, 0.0  ;;  %vm2542_vm5 = vmmov %vm2524_vm0 }
 0x2c6   :  { %1615 = vpow2.f32 %v600_v48  ;;  %633 = vadd.xlane.f32.xlu1 %v632_v49  ;;  %v508_v52 = vsel %vm476_vm3, %v460_v10, %v492_v16  ;;  %vm2541_vm3 = vmmov %vm2524_vm0 }
 0x2c7   :  { %v2051_v53 = vadd.f32 %v508_v52, %v1958_v56  ;;  %v444_v52 = vpop.f32.mrf.mxu3 }
 0x2c9   :  { %v346_v58 = vpop.xlane.xlu0 %345  ;;  %v544_v62 = vpop.xlane.xlu2 %543  ;;  %v560_v46 = vsel %vm2534_vm7, %v2051_v53, -inf  ;;  %vm2543_vm7 = vmmov %vm2524_vm0 }
 0x2ca   :  { %v461_v55 = vadd.f32 %v435_v51, %v346_v58  ;;  %v582_v50 = vsub.f32 %v1992_v59, %v544_v62  ;;  %561 = vmax.xlane.f32.xlu2 %v560_v46 }
 0x2cc   :  { %v2056_v57 = vpop.eup %1615  ;;  %vm477_vm9 = vcmp.ge.f32.partialorder %v461_v55, 0.0  ;;  %v493_v63 = vmul.f32 0.2, %v461_v55  ;;  %v602_v1 = vmul.f32 1.442695, %v582_v50 }
 0x2cd   :  { %v635_v2 = vsel %vm2535_vm10, %v2056_v57, 0.0  ;;  %vm2545_vm10 = vmmov %vm2524_vm0 }
 0x2ce   :  { %1617 = vpow2.f32 %v602_v1  ;;  %636 = vadd.xlane.f32.xlu1 %v635_v2  ;;  %v509_v37 = vsel %vm477_vm9, %v461_v55, %v493_v63  ;;  %vm2544_vm9 = vmmov %vm2524_vm0 }
 0x2cf   :  { %v2061_v18 = vadd.f32 %v509_v37, %v1965_v4 }
 0x2d1   :  { %v547_v15 = vpop.xlane.xlu1 %546  ;;  %v349_v17 = vpop.xlane.xlu2 %348  ;;  %v563_v28 = vsel %vm2536_vm12, %v2061_v18, -inf  ;;  %vm2547_vm12 = vmmov %vm2524_vm0 }
 0x2d2   :  { %v583_v19 = vsub.f32 %v1998_v5, %v547_v15  ;;  %v462_v59 = vadd.f32 %v438_v54, %v349_v17  ;;  %v447_v17 = vpop.f32.mrf.mxu3 }
 0x2d4   :  { %v2064_v21 = vpop.eup %1617  ;;  %v604_v60 = vmul.f32 1.442695, %v583_v19  ;;  %vm478_vm11 = vcmp.ge.f32.partialorder %v462_v59, 0.0  ;;  %v494_v23 = vmul.f32 0.2, %v462_v59 }
 0x2d5   :  { %v638_v9 = vsel %vm2537_vm13, %v2064_v21, 0.0  ;;  %vm2548_vm13 = vmmov %vm2524_vm0 }
 0x2d6   :  { %1619 = vpow2.f32 %v604_v60  ;;  %564 = vmax.xlane.f32.xlu1 %v563_v28  ;;  %639 = vadd.xlane.f32.xlu0 %v638_v9  ;;  %v510_v29 = vsel %vm478_vm11, %v462_v59, %v494_v23  ;;  %vm2546_vm11 = vmmov %vm2524_vm0 }
 0x2d7   :  { %v2071_v5 = vadd.f32 %v510_v29, %v1958_v56 }
 0x2d9   :  { %v550_v51 = vpop.xlane.xlu0 %549  ;;  %v352_v40 = vpop.xlane.xlu2 %351  ;;  %v566_v49 = vsel %vm2539_vm2, %v2071_v5, -inf  ;;  %vm2551_vm2 = vmmov %vm2524_vm0 }
 0x2da   :  { %v584_v42 = vsub.f32 %v2008_v24, %v550_v51  ;;  %v463_v25 = vadd.f32 %v441_v20, %v352_v40 }
 0x2dc   :  { %v2074_v43 = vpop.eup %1619  ;;  %v606_v10 = vmul.f32 1.442695, %v584_v42  ;;  %vm479_vm14 = vcmp.ge.f32.partialorder %v463_v25, 0.0  ;;  %v495_v48 = vmul.f32 0.2, %v463_v25 }
 0x2dd   :  { %v641_v16 = vsel %vm2538_vm15, %v2074_v43, 0.0  ;;  %vm2550_vm15 = vmmov %vm2524_vm0 }
 0x2de   :  { %1621 = vpow2.f32 %v606_v10  ;;  %642 = vadd.xlane.f32.xlu2 %v641_v16  ;;  %567 = vmax.xlane.f32.xlu0 %v566_v49  ;;  %v511_v54 = vsel %vm479_vm14, %v463_v25, %v495_v48  ;;  %vm2549_vm14 = vmmov %vm2524_vm0 }
 0x2df   :  { %v2081_v24 = vadd.f32 %v511_v54, %v1965_v4 }
 0x2e1   :  { %v553_v58 = vpop.xlane.xlu0 %552  ;;  %v355_v62 = vpop.xlane.xlu2 %354  ;;  %v569_v37 = vsel %vm2524_vm0, %v2081_v24, -inf }
 0x2e2   :  { %v585_v46 = vsub.f32 %v2014_v45, %v553_v58  ;;  %v464_v55 = vadd.f32 %v444_v52, %v355_v62 }
 0x2e4   :  { %v2084_v50 = vpop.eup %1621  ;;  %v608_v63 = vmul.f32 1.442695, %v585_v46  ;;  %vm480_vm6 = vcmp.ge.f32.partialorder %v464_v55, 0.0  ;;  %v496_v1 = vmul.f32 0.2, %v464_v55 }
 0x2e5   :  { %v644_v2 = vsel %vm2540_vm8, %v2084_v50, 0.0  ;;  %vm2553_vm8 = vmmov %vm2524_vm0 }
 0x2e6   :  { %1623 = vpow2.f32 %v608_v63  ;;  %645 = vadd.xlane.f32.xlu1 %v644_v2  ;;  %570 = vmax.xlane.f32.xlu2 %v569_v37  ;;  %v512_v15 = vsel %vm480_vm6, %v464_v55, %v496_v1  ;;  %vm2552_vm6 = vmmov %vm2524_vm0 }
 0x2e7   :  { %v2091_v45 = vadd.f32 %v512_v15, %v1958_v56 }
 0x2e9   :  { %v556_v19 = vpop.xlane.xlu0 %555  ;;  %v358_v59 = vpop.xlane.xlu2 %357  ;;  %v572_v51 = vsel %vm2542_vm5, %v2091_v45, -inf  ;;  %vm2556_vm5 = vmmov %vm2524_vm0 }
 0x2ea   :  { %v586_v20 = vsub.f32 %v2024_v61, %v556_v19  ;;  %v465_v60 = vadd.f32 %v447_v17, %v358_v59 }
 0x2ec   :  { %v2094_v23 = vpop.eup %1623  ;;  %v610_v28 = vmul.f32 1.442695, %v586_v20  ;;  %vm481_vm1 = vcmp.ge.f32.partialorder %v465_v60, 0.0  ;;  %v497_v9 = vmul.f32 0.2, %v465_v60 }
 0x2ed   :  { %v647_v29 = vsel %vm2541_vm3, %v2094_v23, 0.0  ;;  %vm2555_vm3 = vmmov %vm2524_vm0 }
 0x2ee   :  { %1625 = vpow2.f32 %v610_v28  ;;  %648 = vadd.xlane.f32.xlu0 %v647_v29  ;;  %573 = vmax.xlane.f32.xlu1 %v572_v51  ;;  %v513_v40 = vsel %vm481_vm1, %v465_v60, %v497_v9  ;;  %vm2554_vm1 = vmmov %vm2524_vm0 }
 0x2ef   :  { %v2101_v56 = vadd.f32 %v513_v40, %v1965_v4 }
 0x2f1   :  { %v575_v25 = vsel %vm2544_vm9, %v2101_v56, -inf  ;;  %vm2558_vm9 = vmmov %vm2524_vm0 }
 0x2f4   :  { %v2103_v61 = vpop.eup %1625 }
 0x2f5   :  { %v650_v42 = vsel %vm2543_vm7, %v2103_v61, 0.0  ;;  %vm2557_vm7 = vmmov %vm2524_vm0 }
 0x2f6   :  { %651 = vadd.xlane.f32.xlu2 %v650_v42  ;;  %576 = vmax.xlane.f32.xlu0 %v575_v25 }
 0x329   :  { %v628_v10 = vpop.xlane.xlu1 %627 }
 0x32a   :  { %1627 = vrcp.f32 %v628_v10 }
 0x330   :  { %v1628_v48 = vpop.eup %1627 }
 0x331   :  { %v631_v16 = vpop.xlane.xlu1 %630  ;;  %v690_v49 = vmul.f32 %v1628_v48, %v2031_v3 }
 0x332   :  { %1629 = vrcp.f32 %v631_v16 }
 0x333   :  { %1526 = vmatmul.msk.f32.vlgmr.msra.gmra.mxu1 %vm2545_vm10, %v690_v49  ;;  %vm2559_vm10 = vmmov %vm2524_vm0 }
 0x335   :  { %v559_v4 = vpop.xlane.xlu0 %558 }
 0x336   :  { %v587_v52 = vsub.f32 %v2041_v32, %v559_v4 }
 0x338   :  { %v1630_v54 = vpop.eup %1629  ;;  %v612_v58 = vmul.f32 1.442695, %v587_v52 }
 0x339   :  { %v634_v62 = vpop.xlane.xlu1 %633  ;;  %v691_v46 = vmul.f32 %v1630_v54, %v2036_v22 }
 0x33a   :  { %1631 = vpow2.f32 %v612_v58 }
 0x33b   :  { %1633 = vrcp.f32 %v634_v62  ;;  %1527 = vmatmul.msk.f32.gmra.mxu1 %vm2546_vm11, %v691_v46  ;;  %vm2560_vm11 = vmmov %vm2524_vm0 }
 0x33d   :  { %v562_v55 = vpop.xlane.xlu2 %561 }
 0x33e   :  { %v588_v63 = vsub.f32 %v2051_v53, %v562_v55 }
 0x340   :  { %v2115_v1 = vpop.eup %1631  ;;  %v614_v3 = vmul.f32 1.442695, %v588_v63 }
 0x341   :  { %v1634_v2 = vpop.eup %1633  ;;  %v637_v37 = vpop.xlane.xlu1 %636  ;;  %v653_v32 = vsel %vm2547_vm12, %v2115_v1, 0.0  ;;  %vm2561_vm12 = vmmov %vm2524_vm0 }
 0x342   :  { %1635 = vpow2.f32 %v614_v3  ;;  %654 = vadd.xlane.f32.xlu1 %v653_v32  ;;  %v692_v15 = vmul.f32 %v1634_v2, %v2046_v47 }
 0x343   :  { %1637 = vrcp.f32 %v637_v37 }
 0x344   :  { %1528 = vmatmul.msk.f32.gmra.mxu1 %vm2548_vm13, %v692_v15  ;;  %vm2562_vm13 = vmmov %vm2524_vm0 }
 0x348   :  { %v2121_v22 = vpop.eup %1635 }
 0x349   :  { %v1638_v17 = vpop.eup %1637  ;;  %v565_v19 = vpop.xlane.xlu1 %564  ;;  %v656_v59 = vsel %vm2549_vm14, %v2121_v22, 0.0  ;;  %vm2563_vm14 = vmmov %vm2524_vm0 }
 0x34a   :  { %v640_v53 = vpop.xlane.xlu0 %639  ;;  %v589_v20 = vsub.f32 %v2061_v18, %v565_v19  ;;  %657 = vadd.xlane.f32.xlu2 %v656_v59  ;;  %v693_v60 = vmul.f32 %v1638_v17, %v2056_v57  ;;  %v125_v17 = vsel %vm2558_vm9, %v1803_v26, 0.0  ;;  %vm2571_vm9 = vmmov %vm2524_vm0 }
 0x34b   :  { %1639 = vrcp.f32 %v640_v53 }
 0x34c   :  { %v616_v28 = vmul.f32 1.442695, %v589_v20  ;;  %1529 = vmatmul.msk.f32.gmra.mxu1 %vm2550_vm15, %v693_v60  ;;  %vm2564_vm15 = vmmov %vm2524_vm0 }
 0x34e   :  { %1641 = vpow2.f32 %v616_v28 }
 0x351   :  { %v1640_v47 = vpop.eup %1639  ;;  %v643_v29 = vpop.xlane.xlu2 %642 }
 0x352   :  { %v568_v9 = vpop.xlane.xlu0 %567  ;;  %v694_v51 = vmul.f32 %v1640_v47, %v2064_v21  ;;  %1643 = vrcp.f32 %v643_v29 }
 0x353   :  { %v590_v40 = vsub.f32 %v2071_v5, %v568_v9 }
 0x354   :  { %v2130_v42 = vpop.eup %1641  ;;  %1530 = vmatmul.msk.f32.gmra.mxu1 %vm2551_vm2, %v694_v51  ;;  %vm2565_vm2 = vmmov %vm2524_vm0 }
 0x355   :  { %v618_v25 = vmul.f32 1.442695, %v590_v40  ;;  %v659_v57 = vsel %vm2552_vm6, %v2130_v42, 0.0  ;;  %vm2566_vm6 = vmmov %vm2524_vm0 }
 0x356   :  { %660 = vadd.xlane.f32.xlu0 %v659_v57 }
 0x357   :  { %1645 = vpow2.f32 %v618_v25 }
 0x358   :  { %v1644_v18 = vpop.eup %1643 }
 0x359   :  { %v646_v10 = vpop.xlane.xlu1 %645  ;;  %v571_v48 = vpop.xlane.xlu2 %570  ;;  %v695_v16 = vmul.f32 %v1644_v18, %v2074_v43 }
 0x35a   :  { %1647 = vrcp.f32 %v646_v10  ;;  %v591_v21 = vsub.f32 %v2081_v24, %v571_v48 }
 0x35c   :  { %v620_v49 = vmul.f32 1.442695, %v591_v21  ;;  %1531 = vmatmul.msk.f32.gmra.mxu1 %vm2553_vm8, %v695_v16  ;;  %vm2567_vm8 = vmmov %vm2524_vm0 }
 0x35d   :  { %v2137_v5 = vpop.eup %1645 }
 0x35e   :  { %v662_v4 = vsel %vm2524_vm0, %v2137_v5, 0.0  ;;  %1649 = vpow2.f32 %v620_v49 }
 0x35f   :  { %663 = vadd.xlane.f32.xlu1 %v662_v4 }
 0x360   :  { %v1648_v52 = vpop.eup %1647 }
 0x361   :  { %v649_v54 = vpop.xlane.xlu0 %648  ;;  %v574_v58 = vpop.xlane.xlu1 %573  ;;  %v696_v62 = vmul.f32 %v1648_v52, %v2084_v50 }
 0x362   :  { %1651 = vrcp.f32 %v649_v54  ;;  %v592_v43 = vsub.f32 %v2091_v45, %v574_v58 }
 0x364   :  { %v2144_v46 = vpop.eup %1649  ;;  %v622_v24 = vmul.f32 1.442695, %v592_v43  ;;  %1532 = vmatmul.msk.f32.gmra.mxu1 %vm2554_vm1, %v696_v62  ;;  %vm2568_vm1 = vmmov %vm2524_vm0 }
 0x365   :  { %v665_v55 = vsel %vm2555_vm3, %v2144_v46, 0.0  ;;  %vm2569_vm3 = vmmov %vm2524_vm0 }
 0x366   :  { %1653 = vpow2.f32 %v622_v24  ;;  %666 = vadd.xlane.f32.xlu2 %v665_v55 }
 0x368   :  { %v1652_v63 = vpop.eup %1651 }
 0x369   :  { %v577_v3 = vpop.xlane.xlu0 %576  ;;  %v652_v2 = vpop.xlane.xlu2 %651  ;;  %v697_v37 = vmul.f32 %v1652_v63, %v2094_v23  ;;  %v128_v23 = vsel %vm2560_vm11, %v1805_v27, 0.0  ;;  %vm2573_vm11 = vmmov %vm2524_vm0 }
 0x36a   :  { %v593_v50 = vsub.f32 %v2101_v56, %v577_v3  ;;  %1655 = vrcp.f32 %v652_v2 }
 0x36c   :  { %v1654_v32 = vpop.eup %1653  ;;  %v624_v45 = vmul.f32 1.442695, %v593_v50  ;;  %1533 = vmatmul.msk.f32.gmra.mxu1 %vm2556_vm5, %v697_v37  ;;  %vm910_vm5 = vcmask 523264  }
 0x36d   :  { %v668_v15 = vsel %vm2557_vm7, %v1654_v32, 0.0  ;;  %vm2570_vm7 = vmmov %vm2524_vm0 }
 0x36e   :  { %1657 = vpow2.f32 %v624_v45  ;;  %669 = vadd.xlane.f32.xlu0 %v668_v15  ;;  %126 = vadd.xlane.f32.xlu2 %v125_v17 }
 0x370   :  { %v1656_v19 = vpop.eup %1655 }
 0x371   :  { %v698_v53 = vmul.f32 %v1656_v19, %v2103_v61 }
 0x374   :  { %v1658_v59 = vpop.eup %1657  ;;  %1534 = vmatmul.msk.f32.gmra.mxu1 %vm2559_vm10, %v698_v53  ;;  %vm2572_vm10 = vcmp.eq.s32.totalorder %v1733_v6, %v1754_v13 }
 0x375   :  { %v671_v56 = vsel %vm2561_vm12, %v1658_v59, 0.0  ;;  %vm2574_vm12 = vcmp.eq.s32.totalorder %v1733_v6, %v1737_v8 }
 0x376   :  { %129 = vadd.xlane.f32.xlu0 %v128_v23  ;;  %672 = vadd.xlane.f32.xlu1 %v671_v56 }
 0x3b0   :  { %v771_v20 = vpop.f32.mrf.mxu1 }
 0x3b1   :  { %v819_v51 = vmul.f32 %v1837_v36, %v771_v20 }
 0x3b5   :  { %v655_v60 = vpop.xlane.xlu1 %654 }
 0x3b6   :  { %1659 = vrcp.f32 %v655_v60 }
 0x3b8   :  { %v774_v28 = vpop.f32.mrf.mxu1 }
 0x3b9   :  { %v820_v16 = vmul.f32 %v1837_v36, %v774_v28 }
 0x3bc   :  { %v1660_v47 = vpop.eup %1659 }
 0x3bd   :  { %v658_v9 = vpop.xlane.xlu2 %657  ;;  %v699_v29 = vmul.f32 %v1660_v47, %v2115_v1 }
 0x3be   :  { %1661 = vrcp.f32 %v658_v9 }
 0x3bf   :  { %1535 = vmatmul.msk.f32.gmra.mxu1 %vm2562_vm13, %v699_v29  ;;  %vm2575_vm13 = vmmov %vm2524_vm0 }
 0x3c1   :  { %v777_v61 = vpop.f32.mrf.mxu1 }
 0x3c2   :  { %v821_v40 = vmul.f32 %v1834_v35, %v777_v61 }
 0x3c4   :  { %v1662_v25 = vpop.eup %1661  ;;  %v835_v57 = vadd.f32 %v821_v40, %v819_v51 }
 0x3c5   :  { %v700_v18 = vmul.f32 %v1662_v25, %v2121_v22 }
 0x3c7   :  { %1536 = vmatmul.msk.f32.gmra.mxu1 %vm2563_vm14, %v700_v18  ;;  %vm2576_vm14 = vcmp.eq.s32.totalorder %v1733_v6, %v1749_v12 }
 0x3c9   :  { %v780_v10 = vpop.f32.mrf.mxu1  ;;  %v661_v48 = vpop.xlane.xlu0 %660 }
 0x3ca   :  { %v822_v1 = vmul.f32 %v1834_v35, %v780_v10  ;;  %1663 = vrcp.f32 %v661_v48 }
 0x3cc   :  { %v836_v21 = vadd.f32 %v822_v1, %v820_v16  ;;  %v1596_v16 = vld [vmem:[%s2513_s5 + $0x2] ss:$0 sm:$0xff] }
 0x3d0   :  { %v1664_v49 = vpop.eup %1663 }
 0x3d1   :  { %v783_v4 = vpop.f32.mrf.mxu1  ;;  %v701_v54 = vmul.f32 %v1664_v49, %v2130_v42 }
 0x3d2   :  { %v664_v52 = vpop.xlane.xlu1 %663  ;;  %v823_v58 = vmul.f32 %v1893_v0, %v783_v4 }
 0x3d3   :  { %1665 = vrcp.f32 %v664_v52  ;;  %1537 = vmatmul.msk.f32.gmra.mxu1 %vm2564_vm15, %v701_v54  ;;  %vm2577_vm15 = vmmov %vm2524_vm0 }
 0x3d4   :  { %v837_v22 = vadd.f32 %v835_v57, %v823_v58  ;;  %v1595_v57 = vld [vmem:[%s2513_s5 + $0x1] ss:$0 sm:$0xff] }
 0x3d9   :  { %v1666_v62 = vpop.eup %1665  ;;  %v786_v43 = vpop.f32.mrf.mxu1 }
 0x3da   :  { %v667_v24 = vpop.xlane.xlu2 %666  ;;  %v702_v36 = vmul.f32 %v1666_v62, %v2137_v5  ;;  %v824_v35 = vmul.f32 %v1893_v0, %v786_v43 }
 0x3db   :  { %1667 = vrcp.f32 %v667_v24 }
 0x3dc   :  { %1538 = vmatmul.msk.f32.gmra.mxu1 %vm2565_vm2, %v702_v36  ;;  %v838_v55 = vadd.f32 %v836_v21, %v824_v35  ;;  %vm2578_vm2 = vcmp.eq.s32.totalorder %v1733_v6, %v1735_v7 }
 0x3dd   :  { %v1481_v13 = vsel %vm2578_vm2, 1.0, %v1679_v14 }
 0x3e1   :  { %v1668_v63 = vpop.eup %1667  ;;  %v670_v3 = vpop.xlane.xlu0 %669 }
 0x3e2   :  { %v703_v42 = vmul.f32 %v1668_v63, %v2144_v46  ;;  %1669 = vrcp.f32 %v670_v3  ;;  %v789_v0 = vpop.f32.mrf.mxu1 }
 0x3e3   :  { %v825_v56 = vmul.f32 %v1906_v11, %v789_v0 }
 0x3e4   :  { %1539 = vmatmul.msk.f32.gmra.mxu1 %vm2566_vm6, %v703_v42  ;;  %v907_v42 = vld [vmem:[%s2511_s4 + $0x68] sm:$0xff]  ;;  %vm2579_vm6 = vmmov %vm2524_vm0 }
 0x3e5   :  { %925 = vmatpush.msrb.mxu2 %v907_v42 }
 0x3e7   :  { %926 = vmatpush.msrb.mxu2 %v906_v33 }
 0x3e8   :  { %v1670_v2 = vpop.eup %1669 }
 0x3e9   :  { %v673_v37 = vpop.xlane.xlu1 %672  ;;  %v704_v50 = vmul.f32 %v1670_v2, %v1654_v32  ;;  %v839_v32 = vadd.f32 %v837_v22, %v825_v56  ;;  %v902_v2 = vld [vmem:[%s2511_s4 + $0x40] sm:$0xff] }
 0x3ea   :  { %1671 = vrcp.f32 %v673_v37  ;;  %v792_v15 = vpop.f32.mrf.mxu1  ;;  %v901_v37 = vld [vmem:[%s2511_s4 + $0x38] sm:$0xff] }
 0x3eb   :  { %v826_v9 = vmul.f32 %v1906_v11, %v792_v15 }
 0x3ec   :  { %1540 = vmatmul.msk.f32.gmra.mxu1 %vm2567_vm8, %v704_v50  ;;  %v900_v50 = vld [vmem:[%s2511_s4 + $0x30] sm:$0xff] }
 0x3ed   :  { %v840_v18 = vadd.f32 %v838_v55, %v826_v9  ;;  %v32_v9 = vld [vmem:[%s2509_s1 + $0x38] sm:$0xff] }
 0x3f0   :  { %v1672_v5 = vpop.eup %1671 }
 0x3f1   :  { %v705_v45 = vmul.f32 %v1672_v5, %v1658_v59 }
 0x3f2   :  { %v795_v17 = vpop.f32.mrf.mxu1 }
 0x3f3   :  { %v827_v60 = vmul.f32 %v1856_v44, %v795_v17 }
 0x3f4   :  { %1541 = vmatmul.msk.f32.gmra.mxu1 %vm2524_vm0, %v705_v45 }
 0x3f5   :  { %v841_v47 = vadd.f32 %v839_v32, %v827_v60 }
 0x43c   :  { %v798_v19 = vpop.f32.mrf.mxu1 }
 0x43d   :  { %v828_v51 = vmul.f32 %v1856_v44, %v798_v19  ;;  %v127_v44 = vpop.xlane.xlu2 %126 }
 0x43e   :  { %v131_v54 = vmax.f32 %v127_v44, 1.0 }
 0x43f   :  { %v842_v11 = vadd.f32 %v840_v18, %v828_v51  ;;  %v983_v51 = vld [vmem:[%s2511_s4 + $0xa0] sm:$0xff] }
 0x440   :  { %1673 = vrcp.f32 %v131_v54  ;;  %v979_v18 = vld [vmem:[%s2511_s4 + $0x80] sm:$0xff]  ;;  %v1017_v54 = vld [vmem:[%s2511_s4 + $0xb8] sm:$0xff] }
 0x444   :  { %v801_v53 = vpop.f32.mrf.mxu1 }
 0x445   :  { %v829_v28 = vmul.f32 %v1845_v38, %v801_v53  ;;  %v1597_v53 = vld [vmem:[%s2513_s5 + $0x3] ss:$0 sm:$0xff] }
 0x446   :  { %v1674_v63 = vpop.eup %1673 }
 0x447   :  { %v843_v29 = vadd.f32 %v841_v47, %v829_v28  ;;  %v135_v30 = vmul.f32 %v1674_v63, %v1803_v26  ;;  %v905_v26 = vld [vmem:[%s2511_s4 + $0x58] sm:$0xff]  ;;  %v29_v47 = vld [vmem:[%s2509_s1 + $0x20] sm:$0xff] }
 0x448   :  { %927 = vmatpush.msrb.mxu2 %v905_v26 }
 0x450   :  { %v804_v23 = vpop.f32.mrf.mxu1 }
 0x451   :  { %v830_v10 = vmul.f32 %v1845_v38, %v804_v23 }
 0x453   :  { %v844_v49 = vadd.f32 %v842_v11, %v830_v10  ;;  %v978_v10 = vld [vmem:[%s2511_s4 + $0x78] sm:$0xff]  ;;  %v1018_v11 = vld [vmem:[%s2511_s4 + $0xc0] sm:$0xff] }
 0x459   :  { %v807_v46 = vpop.f32.mrf.mxu1 }
 0x45a   :  { %v831_v59 = vmul.f32 %v1848_v39, %v807_v46 }
 0x45c   :  { %v845_v40 = vadd.f32 %v843_v29, %v831_v59  ;;  %v31_v29 = vld [vmem:[%s2509_s1 + $0x30] sm:$0xff] }
 0x461   :  { %v810_v20 = vpop.f32.mrf.mxu1 }
 0x462   :  { %v832_v1 = vmul.f32 %v1848_v39, %v810_v20  ;;  %v130_v39 = vpop.xlane.xlu0 %129 }
 0x463   :  { %v132_v35 = vmax.f32 %v130_v39, 1.0  ;;  %v1598_v39 = vld [vmem:[%s2513_s5 + $0x4] ss:$0 sm:$0xff] }
 0x464   :  { %v846_v58 = vadd.f32 %v844_v49, %v832_v1 }
 0x465   :  { %1675 = vrcp.f32 %v132_v35 }
 0x469   :  { %v813_v61 = vpop.f32.mrf.mxu1 }
 0x46a   :  { %v833_v25 = vmul.f32 %v1851_v41, %v813_v61  ;;  %v984_v61 = vld [vmem:[%s2511_s4 + $0xa8] sm:$0xff] }
 0x46c   :  { %v847_v48 = vadd.f32 %v845_v40, %v833_v25  ;;  %v982_v40 = vld [vmem:[%s2511_s4 + $0x98] sm:$0xff]  ;;  %v981_v25 = vld [vmem:[%s2511_s4 + $0x90] sm:$0xff] }
 0x46e   :  { %v851_v21 = vmul.f32 %v1595_v57, %v847_v48  ;;  %v977_v48 = vld [vmem:[%s2511_s4 + $0x70] sm:$0xff] }
 0x470   :  { %v855_v4 = vadd.f32 %v1596_v16, %v851_v21 }
 0x471   :  { %v816_v52 = vpop.f32.mrf.mxu1 }
 0x472   :  { %v834_v22 = vmul.f32 %v1851_v41, %v816_v52  ;;  %v857_v62 = vmax.f32 %v855_v4, 0.0 }
 0x474   :  { %v848_v43 = vadd.f32 %v846_v58, %v834_v22  ;;  %v859_v38 = vadd.f32 %v857_v62, %v194_v31  ;;  %v1676_v31 = vpop.eup %1675  ;;  %v1016_v58 = vld [vmem:[%s2511_s4 + $0xb0] sm:$0xff]  ;;  %v1056_v22 = vld [vmem:[%s2511_s4 + $0xe8] sm:$0xff]  ;;  %v1055_v62 = vld [vmem:[%s2511_s4 + $0xe0] sm:$0xff] }
 0x475   :  { %v136_v41 = vmul.f32 %v1676_v31, %v1805_v27  ;;  %v904_v27 = vld [vmem:[%s2511_s4 + $0x50] sm:$0xff] }
 0x476   :  { %v852_v24 = vmul.f32 %v1595_v57, %v848_v43  ;;  %892 = vrot.lane.b32.xlu1 %v859_v38, %s1680_s11  ;;  %928 = vmatpush.msrb.mxu2 %v904_v27  ;;  %v980_v57 = vld [vmem:[%s2511_s4 + $0x88] sm:$0xff]  ;;  %v1054_v43 = vld [vmem:[%s2511_s4 + $0xd8] sm:$0xff]  ;;  %v1478_v27 = vsel %vm2572_vm10, 1.0, %v1679_v14 }
 0x478   :  { %v856_v36 = vadd.f32 %v1596_v16, %v852_v24  ;;  %v1019_v16 = vld [vmem:[%s2511_s4 + $0xc8] sm:$0xff] }
 0x479   :  { %v30_v24 = vld [vmem:[%s2509_s1 + $0x28] sm:$0xff] }
 0x47a   :  { %v858_v55 = vmax.f32 %v856_v36, 0.0 }
 0x47c   :  { %v860_v3 = vadd.f32 %v858_v55, %v195_v34  ;;  %v903_v34 = vld [vmem:[%s2511_s4 + $0x48] sm:$0xff] }
 0x47d   :  { %929 = vmatpush.msrb.mxu2 %v903_v34  ;;  %v1479_v34 = vsel %vm2574_vm12, 1.0, %v1679_v14  ;;  %vm1311_vm12 = vcmask 64512  }
 0x47e   :  { %894 = vrot.lane.b32.xlu2 %v860_v3, %s1680_s11  ;;  %881 = vmatpush.msra.mxu0 %v860_v3 }
 0x47f   :  { %930 = vmatpush.msrb.mxu2 %v902_v2  ;;  %v1480_v2 = vsel %vm2576_vm14, 1.0, %v1679_v14 }
 0x480   :  { %882 = vmatpush.msra.mxu0 %v859_v38 }
 0x481   :  { %1542 = vmatmul.msk.f32.vlgmr.msra.gmra.mxu0 %vm2568_vm1, %v135_v30  ;;  %931 = vmatpush.msrb.mxu2 %v901_v37 }
 0x483   :  { %932 = vmatpush.msrb.mxu2 %v900_v50 }
 0x485   :  { %1001 = vmatpush.msra.mxu2 %v984_v61 }
 0x486   :  { %51 = vperm.xlu2 %1590, %v30_v24   ;;  %v1309_v24 = vld [vmem:[%s2514_s3 + $0x18] sm:$0xff] }
 0x487   :  { %1002 = vmatpush.msra.mxu2 %v983_v51 }
 0x489   :  { %1543 = vmatmul.msk.f32.gmra.mxu0 %vm2569_vm3, %v136_v41  ;;  %1003 = vmatpush.msra.mxu2 %v982_v40  ;;  %vm2580_vm3 = vmmov %vm2524_vm0  ;;  %v1223_v40 = vld [vmem:[%s2511_s4 + $0x168] sm:$0xff] }
 0x48b   :  { %1004 = vmatpush.msra.mxu2 %v981_v25  ;;  %v1222_v25 = vld [vmem:[%s2511_s4 + $0x160] sm:$0xff] }
 0x48d   :  { %1005 = vmatpush.msra.mxu2 %v980_v57  ;;  %v1221_v57 = vld [vmem:[%s2511_s4 + $0x158] sm:$0xff] }
 0x48f   :  { %1006 = vmatpush.msra.mxu2 %v979_v18 }
 0x491   :  { %1007 = vmatpush.msra.mxu2 %v978_v10  ;;  %v1220_v10 = vld [vmem:[%s2511_s4 + $0x150] sm:$0xff] }
 0x493   :  { %1008 = vmatpush.msra.mxu2 %v977_v48 }
 0x4d8   :  { %v895_v15 = vpop.permute.xlu2 %894 }
 0x4e0   :  { %v52_v50 = vpop.permute.xlu2 %51 }
 0x4e1   :  { %vm64_vm1 = vcmp.eq.s32.totalorder %v1733_v6, %v52_v50 }
 0x4e2   :  { %v1483_v12 = vsel %vm64_vm1, 1.0, %v1679_v14 }
 0x4e8   :  { %v893_v5 = vpop.permute.xlu1 %892 }
 0x4fe   :  { %v884_v45 = vpop.f32.mrf.mxu0 }
 0x4ff   :  { %v898_v0 = vsel %vm94_vm4, %v884_v45, %v893_v5 }
 0x500   :  { %1544 = vmatmul.msk.f32.vlgmr.msrb.gmra.mxu2 %vm910_vm5, %v898_v0 }
 0x501   :  { %1077 = vmatpush.msrb.mxu2 %v1056_v22 }
 0x503   :  { %1078 = vmatpush.msrb.mxu2 %v1055_v62  ;;  %v1308_v62 = vld [vmem:[%s2514_s3 + $0x10] sm:$0xff] }
 0x505   :  { %1079 = vmatpush.msrb.mxu2 %v1054_v43 }
 0x506   :  { %v887_v17 = vpop.f32.mrf.mxu0 }
 0x507   :  { %v899_v19 = vsel %vm94_vm4, %v887_v17, %v895_v15  ;;  %v1600_v15 = vld [vmem:[%s2513_s5 + $0x6] ss:$0 sm:$0xff] }
 0x508   :  { %1545 = vmatmul.msk.f32.gmra.mxu2 %vm910_vm5, %v899_v19 }
 0x583   :  { %v934_v23 = vpop.f32.mrf.mxu2 }
 0x584   :  { %v935_v46 = vadd.f32 %v1597_v53, %v934_v23 }
 0x586   :  { %v940_v56 = vmax.f32 %v935_v46, 0.0 }
 0x588   :  { %v942_v20 = vadd.f32 %v940_v56, %v859_v38  ;;  %v1053_v38 = vld [vmem:[%s2511_s4 + $0xd0] sm:$0xff] }
 0x589   :  { %1080 = vmatpush.msrb.mxu2 %v1053_v38  ;;  %v1370_v38 = vld [vmem:[%s2511_s4 + $0x190] sm:$0xff] }
 0x58a   :  { %969 = vrot.lane.b32.xlu0 %v942_v20, %s1680_s11  ;;  %1397 = vmatpush.msrb.mxu3 %v1370_v38 }
 0x58b   :  { %v937_v60 = vpop.f32.mrf.mxu2 }
 0x58c   :  { %v938_v32 = vadd.f32 %v1597_v53, %v937_v60  ;;  %v1104_v60 = vld [vmem:[%s2511_s4 + $0x110] sm:$0xff] }
 0x58e   :  { %v941_v28 = vmax.f32 %v938_v32, 0.0  ;;  %v1103_v32 = vld [vmem:[%s2511_s4 + $0x108] sm:$0xff] }
 0x590   :  { %v943_v59 = vadd.f32 %v941_v28, %v860_v3  ;;  %v1599_v3 = vld [vmem:[%s2513_s5 + $0x5] ss:$0 sm:$0xff] }
 0x591   :  { %v1102_v28 = vld [vmem:[%s2511_s4 + $0x100] sm:$0xff] }
 0x592   :  { %48 = vperm.xlu0 %1588, %v29_v47   ;;  %971 = vrot.lane.b32.xlu1 %v943_v59, %s1680_s11  ;;  %v1101_v47 = vld [vmem:[%s2511_s4 + $0xf8] sm:$0xff] }
 0x593   :  { %958 = vmatpush.msrb.mxu0 %v943_v59  ;;  %v1100_v59 = vld [vmem:[%s2511_s4 + $0xf0] sm:$0xff] }
 0x595   :  { %959 = vmatpush.msrb.mxu0 %v942_v20  ;;  %v1105_v20 = vld [vmem:[%s2511_s4 + $0x118] sm:$0xff] }
 0x596   :  { %1546 = vmatmul.msk.f32.vlgmr.msrb.gmra.mxu0 %vm2570_vm7, %v135_v30 }
 0x597   :  { %1040 = vmatpush.msra.mxu0 %v1019_v16  ;;  %v1219_v16 = vld [vmem:[%s2511_s4 + $0x148] sm:$0xff] }
 0x599   :  { %1041 = vmatpush.msra.mxu0 %v1018_v11 }
 0x59a   :  { %57 = vperm.xlu0 %1588, %v32_v9   ;;  %54 = vperm.xlu1 %1589, %v31_v29   ;;  %v1310_v9 = vld [vmem:[%s2511_s4 + $0x170] sm:$0xff] }
 0x59b   :  { %1042 = vmatpush.msra.mxu0 %v1017_v54 }
 0x59d   :  { %1043 = vmatpush.msra.mxu0 %v1016_v58  ;;  %v1307_v58 = vld [vmem:[%s2514_s3 + $0x8] sm:$0xff] }
 0x59e   :  { %1547 = vmatmul.msk.f32.gmra.mxu0 %vm2571_vm9, %v136_v41  ;;  %vm2581_vm9 = vmmov %vm2524_vm0 }
 0x5fc   :  { %v970_v1 = vpop.permute.xlu0 %969 }
 0x604   :  { %v972_v49 = vpop.permute.xlu1 %971  ;;  %v49_v37 = vpop.permute.xlu0 %48 }
 0x605   :  { %vm63_vm8 = vcmp.eq.s32.totalorder %v1733_v6, %v49_v37  ;;  %v1421_v37 = vld [vmem:[%s2511_s4 + $0x1b0] sm:$0xff] }
 0x606   :  { %v1482_v8 = vsel %vm63_vm8, 1.0, %v1679_v14  ;;  %1448 = vmatpush.msrb.mxu1 %v1421_v37 }
 0x60c   :  { %v55_v5 = vpop.permute.xlu1 %54  ;;  %v58_v45 = vpop.permute.xlu0 %57 }
 0x60d   :  { %vm65_vm7 = vcmp.eq.s32.totalorder %v1733_v6, %v55_v5  ;;  %vm66_vm10 = vcmp.eq.s32.totalorder %v1733_v6, %v58_v45  ;;  %v1107_v6 = vld [vmem:[%s2511_s4 + $0x128] sm:$0xff] }
 0x60e   :  { %v1484_v7 = vsel %vm65_vm7, 1.0, %v1679_v14  ;;  %v1485_v0 = vsel %vm66_vm10, 1.0, %v1679_v14  ;;  %v1106_v14 = vld [vmem:[%s2511_s4 + $0x120] sm:$0xff]  ;;  %1124 = vmatpush.msrb.mxu0 %v1107_v6 }
 0x610   :  { %1125 = vmatpush.msrb.mxu0 %v1106_v14 }
 0x612   :  { %1126 = vmatpush.msrb.mxu0 %v1105_v20 }
 0x613   :  { %v961_v21 = vpop.f32.mrf.mxu0 }
 0x614   :  { %v975_v44 = vsel %vm94_vm4, %v961_v21, %v970_v1  ;;  %1127 = vmatpush.msrb.mxu0 %v1104_v60  ;;  %v1218_v1 = vld [vmem:[%s2511_s4 + $0x140] sm:$0xff] }
 0x615   :  { %1548 = vmatmul.msk.f32.vlgmr.msra.gmra.mxu2 %vm910_vm5, %v975_v44 }
 0x616   :  { %1128 = vmatpush.msrb.mxu0 %v1103_v32  ;;  %v1420_v32 = vld [vmem:[%s2511_s4 + $0x1a8] sm:$0xff] }
 0x617   :  { %1449 = vmatpush.msrb.mxu1 %v1420_v32 }
 0x618   :  { %1129 = vmatpush.msrb.mxu0 %v1102_v28  ;;  %v1419_v28 = vld [vmem:[%s2511_s4 + $0x1a0] sm:$0xff] }
 0x619   :  { %1450 = vmatpush.msrb.mxu1 %v1419_v28 }
 0x61a   :  { %1130 = vmatpush.msrb.mxu0 %v1101_v47 }
 0x61b   :  { %v964_v4 = vpop.f32.mrf.mxu0 }
 0x61c   :  { %v976_v52 = vsel %vm94_vm4, %v964_v4, %v972_v49  ;;  %1131 = vmatpush.msrb.mxu0 %v1100_v59  ;;  %v1306_v49 = vld [vmem:[%s2514_s3] sm:$0xff]  ;;  %v1217_v4 = vld [vmem:[%s2511_s4 + $0x138] sm:$0xff] }
 0x61d   :  { %1549 = vmatmul.msk.f32.gmra.mxu2 %vm910_vm5, %v976_v52  ;;  %v1216_v52 = vld [vmem:[%s2511_s4 + $0x130] sm:$0xff] }
 0x698   :  { %v1010_v36 = vpop.f32.mrf.mxu2 }
 0x699   :  { %v2306_v35 = vadd.f32 %v1598_v39, %v1010_v36  ;;  %v1369_v36 = vld [vmem:[%s2511_s4 + $0x188] sm:$0xff] }
 0x69a   :  { %1398 = vmatpush.msrb.mxu3 %v1369_v36 }
 0x69b   :  { %1550 = vmatmul.msk.f32.vlgmr.msra.gmra.mxu0 %vm94_vm4, %v2306_v35 }
 0x69c   :  { %1248 = vmatpush.msra.mxu0 %v1223_v40 }
 0x69e   :  { %1249 = vmatpush.msra.mxu0 %v1222_v25 }
 0x6a0   :  { %v1013_v55 = vpop.f32.mrf.mxu2  ;;  %1250 = vmatpush.msra.mxu0 %v1221_v57 }
 0x6a1   :  { %v2310_v63 = vadd.f32 %v1598_v39, %v1013_v55  ;;  %v1368_v55 = vld [vmem:[%s2511_s4 + $0x180] sm:$0xff] }
 0x6a2   :  { %1251 = vmatpush.msra.mxu0 %v1220_v10  ;;  %1399 = vmatpush.msrb.mxu3 %v1368_v55 }
 0x6a3   :  { %1551 = vmatmul.msk.f32.gmra.mxu0 %vm94_vm4, %v2310_v63  ;;  %1189 = vmatpush.msra.mxu2 %v2310_v63 }
 0x6a5   :  { %1190 = vmatpush.msra.mxu2 %v2306_v35 }
 0x718   :  { %v1045_v30 = vpop.f32.mrf.mxu0 }
 0x719   :  { %v1046_v31 = vadd.f32 %v1599_v3, %v1045_v30 }
 0x71b   :  { %v1051_v41 = vmax.f32 %v1046_v31, 0.0 }
 0x71d   :  { %1552 = vmatmul.msk.f32.vlgmr.msrb.gmra.mxu2 %vm94_vm4, %v1051_v41  ;;  %v1367_v41 = vld [vmem:[%s2511_s4 + $0x178] sm:$0xff] }
 0x71e   :  { %1339 = vmatpush.msrb.mxu2 %v1310_v9  ;;  %1400 = vmatpush.msrb.mxu3 %v1367_v41 }
 0x720   :  { %v1048_v42 = vpop.f32.mrf.mxu0 }
 0x721   :  { %v1049_v33 = vadd.f32 %v1599_v3, %v1048_v42  ;;  %v1601_v3 = vld [vmem:[%s2513_s5 + $0x7] ss:$0 sm:$0xff] }
 0x723   :  { %v1052_v26 = vmax.f32 %v1049_v33, 0.0 }
 0x725   :  { %1553 = vmatmul.msk.f32.gmra.mxu2 %vm94_vm4, %v1052_v26 }
 0x72d   :  { %1556 = vmatmul.msk.f32.vlgmr.msra.gmra.mxu2 %vm2573_vm11, %v1478_v27  ;;  %vm2582_vm11 = vmmov %vm2524_vm0 }
 0x735   :  { %1557 = vmatmul.msk.f32.gmra.mxu2 %vm2575_vm13, %v1479_v34 }
 0x73d   :  { %1558 = vmatmul.msk.f32.gmra.mxu2 %vm2577_vm15, %v1480_v2 }
 0x745   :  { %1559 = vmatmul.msk.f32.gmra.mxu2 %vm2579_vm6, %v1481_v13 }
 0x74d   :  { %1560 = vmatmul.msk.f32.gmra.mxu2 %vm2524_vm0, %v1482_v8 }
 0x755   :  { %1561 = vmatmul.msk.f32.gmra.mxu2 %vm2580_vm3, %v1483_v12  ;;  %v1602_v12 = vld [vmem:[%s2513_s5 + $0x8] ss:$0 sm:$0xff] }
 0x75d   :  { %1562 = vmatmul.msk.f32.gmra.mxu2 %vm2581_vm9, %v1484_v7 }
 0x765   :  { %1563 = vmatmul.msk.f32.gmra.mxu2 %vm2582_vm11, %v1485_v0 }
 0x76d   :  { %1572 = vmatmul.msk.f32.vlgmr.msrb.gmra.mxu2 %vm1311_vm12, %v1306_v49 }
 0x775   :  { %1573 = vmatmul.msk.f32.gmra.mxu2 %vm1311_vm12, %v1307_v58 }
 0x77d   :  { %1574 = vmatmul.msk.f32.gmra.mxu2 %vm1311_vm12, %v1308_v62 }
 0x785   :  { %1575 = vmatmul.msk.f32.gmra.mxu2 %vm1311_vm12, %v1309_v24 }
 0x7a0   :  { %v1082_v17 = vpop.f32.mrf.mxu2 }
 0x7a1   :  { %v1083_v19 = vadd.f32 %v1600_v15, %v1082_v17 }
 0x7a3   :  { %v1088_v53 = vmax.f32 %v1083_v19, 0.0 }
 0x7a5   :  { %1092 = vrot.lane.b32.xlu2 %v1088_v53, %s1680_s11 }
 0x7a8   :  { %v1085_v23 = vpop.f32.mrf.mxu2 }
 0x7a9   :  { %v1086_v46 = vadd.f32 %v1600_v15, %v1085_v23 }
 0x7ab   :  { %v1089_v56 = vmax.f32 %v1086_v46, 0.0 }
 0x7ad   :  { %1094 = vrot.lane.b32.xlu1 %v1089_v56, %s1680_s11 }
 0x7b0   :  { %v1192_v29 = vpop.f32.mrf.mxu2 }
 0x7b8   :  { %v1195_v18 = vpop.f32.mrf.mxu2 }
 0x7c0   :  { %v1198_v48 = vpop.f32.mrf.mxu2 }
 0x7c8   :  { %v1201_v11 = vpop.f32.mrf.mxu2 }
 0x7d0   :  { %v1204_v54 = vpop.f32.mrf.mxu2 }
 0x7d8   :  { %v1207_v22 = vpop.f32.mrf.mxu2 }
 0x7e0   :  { %v1210_v43 = vpop.f32.mrf.mxu2 }
 0x7e8   :  { %v1213_v39 = vpop.f32.mrf.mxu2 }
 0x7f0   :  { %v1341_v13 = vpop.f32.mrf.mxu2 }
 0x7f8   :  { %v1344_v7 = vpop.f32.mrf.mxu2 }
 0x7ff   :  { %v1093_v61 = vpop.permute.xlu2 %1092 }
 0x800   :  { %v1098_v51 = vsel %vm94_vm4, %v2306_v35, %v1093_v61  ;;  %v1347_v23 = vpop.f32.mrf.mxu2 }
 0x801   :  { %1554 = vmatmul.msk.f32.vlgmr.msrb.gmra.mxu0 %vm910_vm5, %v1098_v51 }
 0x802   :  { %1289 = vmatpush.msrb.mxu0 %v1219_v16 }
 0x804   :  { %1290 = vmatpush.msrb.mxu0 %v1218_v1 }
 0x806   :  { %1291 = vmatpush.msrb.mxu0 %v1217_v4 }
 0x808   :  { %1292 = vmatpush.msrb.mxu0 %v1216_v52  ;;  %v1350_v59 = vpop.f32.mrf.mxu2 }
 0x81f   :  { %v1095_v21 = vpop.permute.xlu1 %1094 }
 0x820   :  { %v1099_v44 = vsel %vm94_vm4, %v2310_v63, %v1095_v21 }
 0x821   :  { %1555 = vmatmul.msk.f32.gmra.mxu0 %vm910_vm5, %v1099_v44 }
 0x829   :  { %1564 = vmatmul.msk.f32.vlgmr.msra.gmra.mxu0 %vm94_vm4, %v1204_v54 }
 0x831   :  { %1565 = vmatmul.msk.f32.gmra.mxu0 %vm94_vm4, %v1207_v22  ;;  %v1604_v22 = vld [vmem:[%s2513_s5 + $0xa] ss:$0 sm:$0xff] }
 0x839   :  { %1566 = vmatmul.msk.f32.gmra.mxu0 %vm94_vm4, %v1210_v43 }
 0x841   :  { %1567 = vmatmul.msk.f32.gmra.mxu0 %vm94_vm4, %v1213_v39 }
 0x849   :  { %1568 = vmatmul.msk.f32.vlgmr.msrb.gmra.mxu0 %vm94_vm4, %v1192_v29  ;;  %v1418_v29 = vld [vmem:[%s2511_s4 + $0x198] sm:$0xff] }
 0x84a   :  { %1451 = vmatpush.msrb.mxu1 %v1418_v29 }
 0x851   :  { %1569 = vmatmul.msk.f32.gmra.mxu0 %vm94_vm4, %v1195_v18 }
 0x859   :  { %1570 = vmatmul.msk.f32.gmra.mxu0 %vm94_vm4, %v1198_v48  ;;  %v1603_v48 = vld [vmem:[%s2513_s5 + $0x9] ss:$0 sm:$0xff] }
 0x861   :  { %1571 = vmatmul.msk.f32.gmra.mxu0 %vm94_vm4, %v1201_v11 }
 0x87e   :  { %v1133_v30 = vpop.f32.mrf.mxu0 }
 0x87f   :  { %v1134_v31 = vadd.f32 %v1601_v3, %v1133_v30 }
 0x881   :  { %1141 = vrot.lane.b32.xlu0 %v1134_v31, %s1680_s11 }
 0x89e   :  { %v1136_v42 = vpop.f32.mrf.mxu0 }
 0x89f   :  { %v1137_v33 = vadd.f32 %v1601_v3, %v1136_v42 }
 0x8a1   :  { %1143 = vrot.lane.b32.xlu2 %v1137_v33, %s1680_s11 }
 0x8a6   :  { %v1253_v26 = vpop.f32.mrf.mxu0 }
 0x8ae   :  { %v1256_v27 = vpop.f32.mrf.mxu0 }
 0x8b6   :  { %v1259_v34 = vpop.f32.mrf.mxu0 }
 0x8be   :  { %v1262_v2 = vpop.f32.mrf.mxu0 }
 0x8c6   :  { %v1294_v8 = vpop.f32.mrf.mxu0 }
 0x8c7   :  { %v1295_v50 = vadd.f32 %v1294_v8, %v1253_v26 }
 0x8c9   :  { %v1353_v5 = vadd.f32 %v1341_v13, %v1295_v50 }
 0x8cb   :  { %v1359_v45 = vadd.f32 %v1602_v12, %v1353_v5 }
 0x8cd   :  { %v1363_v0 = vmax.f32 %v1359_v45, 0.0 }
 0x8ce   :  { %v1297_v15 = vpop.f32.mrf.mxu0 }
 0x8cf   :  { %v1298_v17 = vadd.f32 %v1297_v15, %v1256_v27  ;;  %1576 = vmatmul.msk.f32.vlgmr.msrb.gmra.mxu3 %vm94_vm4, %v1363_v0 }
 0x8d1   :  { %v1354_v19 = vadd.f32 %v1344_v7, %v1298_v17 }
 0x8d3   :  { %v1360_v53 = vadd.f32 %v1602_v12, %v1354_v19 }
 0x8d5   :  { %v1364_v46 = vmax.f32 %v1360_v53, 0.0 }
 0x8d6   :  { %v1300_v56 = vpop.f32.mrf.mxu0 }
 0x8d7   :  { %v1301_v6 = vadd.f32 %v1300_v56, %v1259_v34  ;;  %1577 = vmatmul.msk.f32.gmra.mxu3 %vm94_vm4, %v1364_v46 }
 0x8d9   :  { %v1355_v14 = vadd.f32 %v1347_v23, %v1301_v6 }
 0x8db   :  { %v1361_v20 = vadd.f32 %v1602_v12, %v1355_v14 }
 0x8dd   :  { %v1365_v60 = vmax.f32 %v1361_v20, 0.0 }
 0x8de   :  { %v1303_v47 = vpop.f32.mrf.mxu0 }
 0x8df   :  { %v1304_v9 = vadd.f32 %v1303_v47, %v1262_v2  ;;  %1578 = vmatmul.msk.f32.gmra.mxu3 %vm94_vm4, %v1365_v60 }
 0x8e1   :  { %v1356_v61 = vadd.f32 %v1350_v59, %v1304_v9 }
 0x8e3   :  { %v1362_v51 = vadd.f32 %v1602_v12, %v1356_v61 }
 0x8e5   :  { %v1366_v40 = vmax.f32 %v1362_v51, 0.0 }
 0x8e7   :  { %1579 = vmatmul.msk.f32.gmra.mxu3 %vm94_vm4, %v1366_v40 }
 0x8f3   :  { %v1142_v25 = vpop.permute.xlu0 %1141 }
 0x8f4   :  { %v1147_v57 = vsel %vm94_vm4, %v2306_v35, %v1142_v25 }
 0x8f5   :  { %1149 = vst.msk [vmem:[%s2515_s6] sm:$0xff] %vm910_vm5, %v1147_v57 }
 0x8fb   :  { %v1144_v18 = vpop.permute.xlu2 %1143 }
 0x8fc   :  { %v1148_v10 = vsel %vm94_vm4, %v2310_v63, %v1144_v18 }
 0x8fd   :  { %1150 = vst.msk [vmem:[%s2515_s6 + $0x8] sm:$0xff] %vm910_vm5, %v1148_v10  ;;  %vm1465_vm5 = vcmask 7168  }
 0x952   :  { %v1402_v16 = vpop.f32.mrf.mxu3 }
 0x953   :  { %v1403_v35 = vadd.f32 %v1603_v48, %v1402_v16 }
 0x955   :  { %v1414_v11 = vmax.f32 %v1403_v35, 0.0 }
 0x957   :  { %1580 = vmatmul.msk.f32.vlgmr.msrb.gmra.mxu1 %vm94_vm4, %v1414_v11 }
 0x95a   :  { %v1405_v1 = vpop.f32.mrf.mxu3 }
 0x95b   :  { %v1406_v21 = vadd.f32 %v1603_v48, %v1405_v1 }
 0x95d   :  { %v1415_v44 = vmax.f32 %v1406_v21, 0.0 }
 0x95f   :  { %1581 = vmatmul.msk.f32.gmra.mxu1 %vm94_vm4, %v1415_v44 }
 0x962   :  { %v1408_v63 = vpop.f32.mrf.mxu3 }
 0x963   :  { %v1409_v49 = vadd.f32 %v1603_v48, %v1408_v63 }
 0x965   :  { %v1416_v4 = vmax.f32 %v1409_v49, 0.0 }
 0x967   :  { %1582 = vmatmul.msk.f32.gmra.mxu1 %vm94_vm4, %v1416_v4 }
 0x96a   :  { %v1411_v52 = vpop.f32.mrf.mxu3 }
 0x96b   :  { %v1412_v54 = vadd.f32 %v1603_v48, %v1411_v52 }
 0x96d   :  { %v1417_v58 = vmax.f32 %v1412_v54, 0.0 }
 0x96f   :  { %1583 = vmatmul.msk.f32.gmra.mxu1 %vm94_vm4, %v1417_v58 }
 0x9d4   :  { %v1453_v62 = vpop.f32.mrf.mxu1 }
 0x9d5   :  { %v1454_v43 = vadd.f32 %v1604_v22, %v1453_v62 }
 0x9d7   :  { %1466 = vst.msk [vmem:[%s2516_s7] sm:$0xff] %vm1465_vm5, %v1454_v43 }
 0x9dc   :  { %v1456_v38 = vpop.f32.mrf.mxu1 }
 0x9dd   :  { %v1457_v24 = vadd.f32 %v1604_v22, %v1456_v38 }
 0x9df   :  { %1467 = vst.msk [vmem:[%s2516_s7 + $0x8] sm:$0xff] %vm1465_vm5, %v1457_v24 }
 0x9e4   :  { %v1459_v39 = vpop.f32.mrf.mxu1 }
 0x9e5   :  { %v1460_v36 = vadd.f32 %v1604_v22, %v1459_v39 }
 0x9e7   :  { %1468 = vst.msk [vmem:[%s2516_s7 + $0x10] sm:$0xff] %vm1465_vm5, %v1460_v36 }
 0x9ec   :  { %v1462_v55 = vpop.f32.mrf.mxu1 }
 0x9ed   :  { %v1463_v3 = vadd.f32 %v1604_v22, %v1462_v55 }
 0x9ef   :  { %1469 = vst.msk [vmem:[%s2516_s7 + $0x18] sm:$0xff] %vm1465_vm5, %v1463_v3 }

</bundles_post_ra>
